<compile_context>
chip_gen: v5e
topology: v5e:2x2
jax: 0.10.0
libtpu: 0.0.40
codegen_flags: <defaults>
</compile_context>

<pallas_src>
import functools

import jax
import jax.numpy as jnp
from jax import lax
from jax.experimental import pallas as pl
from jax.experimental.pallas import tpu as pltpu

KH = KW = 3
BN_EPS = 1e-5
LANES = 128


# ----------------------------------------------------------------------------- pass 1
def _pass1_kernel(x_ref, dw_ref, pw_ref, y_ref, stats_ref, xpad_ref):
    # x_ref:     (1, H, W, Cin)   one un-padded image, NHWC
    # dw_ref:    (9, Cin)         depthwise taps, tap-major
    # pw_ref:    (Cin, Cp)        pointwise weights, lane-padded Cout -> Cp
    # y_ref:     (1, H*W, Cp)     per-image pointwise(depthwise(x)) (f32)
    # stats_ref: (2, Cp)          cross-grid accumulator [sum(y2); sum(y2^2)]
    # xpad_ref:  (H+2, W+2, Cin)  persistent VMEM scratch (zero border)
    _, H, W, Cin = x_ref.shape
    HW = y_ref.shape[1]

    @pl.when(pl.program_id(0) == 0)
    def _():
        stats_ref[...] = jnp.zeros_like(stats_ref)
        xpad_ref[...] = jnp.zeros_like(xpad_ref)   # border stays zero for all steps

    # Write the interior of the padded tile (padding=1 done in VMEM, no HBM pad pass).
    xpad_ref[1:H + 1, 1:W + 1, :] = x_ref[0].astype(jnp.float32)

    # Depthwise 3x3: 9 shifted VPU multiply-adds (per-channel), no MXU / im2col blowup.
    dw = dw_ref[...].astype(jnp.float32)                     # (9, Cin)
    acc = None
    for kh in range(KH):
        for kw in range(KW):
            tap = xpad_ref[kh:kh + H, kw:kw + W, :]          # (H, W, Cin)  static slice
            contrib = tap * dw[kh * KW + kw, :]              # broadcast over lanes
            acc = contrib if acc is None else acc + contrib

    # Pointwise 1x1 as one MXU matmul: (HW, Cin) @ (Cin, Cp) -> lane-dense (HW, Cp).
    y2 = jnp.dot(acc.reshape(HW, Cin), pw_ref[...],
                 preferred_element_type=jnp.float32)
    y_ref[0] = y2.astype(y_ref.dtype)

    # BN statistics (phase 1): per-channel sum and sum-of-squares of y2.
    s1 = jnp.sum(y2, axis=0, keepdims=True)                  # (1, Cp)
    s2 = jnp.sum(y2 * y2, axis=0, keepdims=True)             # (1, Cp)
    stats_ref[...] += jnp.concatenate([s1, s2], axis=0)


# ----------------------------------------------------------------------------- pass 2
def _pass2_kernel(y_ref, x_ref, stats_ref, sc_ref, gamma_ref, beta_ref, out_ref,
                  *, n_total):
    # y_ref:   (1, H*W, Cp)   pointwise(depthwise(x))
    # x_ref:   (1, H, W, Cin) original image (shortcut recomputed here -> no res2 in HBM)
    # stats:   (2, Cp)        global [sum; sumsq] of y2
    # sc_ref:  (Cin, Cp)      shortcut 1x1 weights (identity matrix if Cin == Cout)
    # gamma/beta: (1, Cp)
    # out_ref: (1, H*W, Cp)
    _, H, W, Cin = x_ref.shape
    HW, Cp = out_ref.shape[1], out_ref.shape[2]

    y2 = y_ref[0].astype(jnp.float32)                        # (HW, Cp)
    x_flat = x_ref[0].astype(jnp.float32).reshape(HW, Cin)
    res = jnp.dot(x_flat, sc_ref[...], preferred_element_type=jnp.float32)

    inv_n = 1.0 / n_total
    mean = stats_ref[0:1, :] * inv_n                         # (1, Cp)
    msq = stats_ref[1:2, :] * inv_n
    var = jnp.maximum(msq - mean * mean, 0.0)
    inv_std = lax.rsqrt(var + BN_EPS)
    scale = gamma_ref[...].astype(jnp.float32) * inv_std     # (1, Cp)
    shift = beta_ref[...].astype(jnp.float32) - mean * scale

    out = jnp.maximum(y2 * scale + shift + res, 0.0)         # (HW, Cp)
    out_ref[0] = out.astype(out_ref.dtype)


# ----------------------------------------------------------------------------- helpers
def _scoped_vmem_limit(per_step_bytes):
    """Raise the scoped-VMEM limit only when the default (16/32 MiB) is too small.

    Streamed blocks are double-buffered by the pipeline, so budget 2x + headroom.
    Capped at 64 MiB (v7x physical VMEM); re-derive tile sizes if this is hit.
    """
    needed = 2 * int(per_step_bytes) + (4 << 20)
    if needed <= (16 << 20):
        return None
    return min(needed, 64 << 20)


# ----------------------------------------------------------------------------- wrapper
def residual_dsc_block(x_nchw, dw_w, pw_w, sc_w, gamma, beta):
    """Forward of ResidualDSCBlock (training-mode BatchNorm).

    x_nchw: (B, Cin, H, W)
    dw_w:   (Cin, 1, 3, 3)    depthwise Conv2d weight (groups=Cin, bias=False)
    pw_w:   (Cout, Cin, 1, 1) pointwise Conv2d weight
    sc_w:   (Cout, Cin, 1, 1) shortcut Conv2d weight, or None for Identity (Cin == Cout)
    gamma, beta: (Cout,)      BatchNorm2d affine params
    Returns (B, Cout, H, W).
    """
    B, Cin, H, W = x_nchw.shape
    Cout = pw_w.shape[0]
    Cp = ((Cout + LANES - 1) // LANES) * LANES               # lane-dense channel count
    HW = H * W
    N = B * HW

    # NCHW -> NHWC (channels on the lane axis).  Interface-imposed; keep the
    # surrounding model NHWC end-to-end to drop these transposes entirely.
    x_nhwc = jnp.transpose(x_nchw, (0, 2, 3, 1)).astype(jnp.float32)

    # ---- weight reshapes (tiny, done once in XLA) ----
    dw_t = jnp.transpose(dw_w[:, 0, :, :], (1, 2, 0)).reshape(KH * KW, Cin) \
        .astype(jnp.float32)                                                 # (9, Cin)
    pw_t = jnp.transpose(pw_w[:, :, 0, 0], (1, 0)).astype(jnp.float32)       # (Cin, Cout)
    if sc_w is None:  # nn.Identity shortcut (in_channels == out_channels)
        sc_t = jnp.eye(Cin, Cout, dtype=jnp.float32)
    else:
        sc_t = jnp.transpose(sc_w[:, :, 0, 0], (1, 0)).astype(jnp.float32)   # (Cin, Cout)

    pw_p = jnp.pad(pw_t, ((0, 0), (0, Cp - Cout)))                           # (Cin, Cp)
    sc_p = jnp.pad(sc_t, ((0, 0), (0, Cp - Cout)))                           # (Cin, Cp)
    gamma_p = jnp.pad(gamma.astype(jnp.float32), (0, Cp - Cout)).reshape(1, Cp)
    beta_p = jnp.pad(beta.astype(jnp.float32), (0, Cp - Cout)).reshape(1, Cp)

    # ---- pass 1: depthwise (VPU) + pointwise (MXU) + BN stat accumulation ----
    p1_step_bytes = 4 * (2 * HW * Cin                 # input tile + dw accumulator
                         + (H + 2) * (W + 2) * Cin    # padded scratch
                         + KH * KW * Cin + Cin * Cp   # weights
                         + HW * Cp                    # y2 tile
                         + 2 * Cp)                    # stats
    y2, stats = pl.pallas_call(
        _pass1_kernel,
        out_shape=(jax.ShapeDtypeStruct((B, HW, Cp), jnp.float32),
                   jax.ShapeDtypeStruct((2, Cp), jnp.float32)),
        grid=(B,),
        in_specs=[
            pl.BlockSpec((1, H, W, Cin), lambda b: (b, 0, 0, 0)),
            pl.BlockSpec((KH * KW, Cin), lambda b: (0, 0)),
            pl.BlockSpec((Cin, Cp), lambda b: (0, 0)),
        ],
        out_specs=(
            pl.BlockSpec((1, HW, Cp), lambda b: (b, 0, 0)),
            pl.BlockSpec((2, Cp), lambda b: (0, 0)),      # resident cross-grid accumulator
        ),
        scratch_shapes=[pltpu.VMEM((H + 2, W + 2, Cin), jnp.float32)],
        compiler_params=pltpu.CompilerParams(
            dimension_semantics=("arbitrary",),           # stats accumulated across grid
            vmem_limit_bytes=_scoped_vmem_limit(p1_step_bytes)),
    )(x_nhwc, dw_t, pw_p)

    # ---- pass 2: normalize + shortcut 1x1 (recomputed) + residual + ReLU ----
    p2_step_bytes = 4 * (2 * HW * Cp + 2 * HW * Cin + Cin * Cp + 6 * Cp)
    out_flat = pl.pallas_call(
        functools.partial(_pass2_kernel, n_total=float(N)),
        out_shape=jax.ShapeDtypeStruct((B, HW, Cp), x_nchw.dtype),
        grid=(B,),
        in_specs=[
            pl.BlockSpec((1, HW, Cp), lambda b: (b, 0, 0)),
            pl.BlockSpec((1, H, W, Cin), lambda b: (b, 0, 0, 0)),
            pl.BlockSpec((2, Cp), lambda b: (0, 0)),
            pl.BlockSpec((Cin, Cp), lambda b: (0, 0)),
            pl.BlockSpec((1, Cp), lambda b: (0, 0)),
            pl.BlockSpec((1, Cp), lambda b: (0, 0)),
        ],
        out_specs=pl.BlockSpec((1, HW, Cp), lambda b: (b, 0, 0)),
        compiler_params=pltpu.CompilerParams(
            dimension_semantics=("parallel",),            # shards across v7x's 2 TCs
            vmem_limit_bytes=_scoped_vmem_limit(p2_step_bytes)),
    )(y2, x_nhwc, stats, sc_p, gamma_p, beta_p)

    out_nhwc = out_flat.reshape(B, H, W, Cp)[..., :Cout]
    return jnp.transpose(out_nhwc, (0, 3, 1, 2))


# ----------------------------------------------------------------------------- reference
def reference_jax(x, dw_w, pw_w, sc_w, gamma, beta):
    """Pure-JAX reference matching the PyTorch forward (training-mode BN)."""
    Cin = x.shape[1]
    dn = ('NCHW', 'OIHW', 'NCHW')
    dw_out = lax.conv_general_dilated(x, dw_w, (1, 1), ((1, 1), (1, 1)),
                                      feature_group_count=Cin, dimension_numbers=dn)
    pw_out = lax.conv_general_dilated(dw_out, pw_w, (1, 1), 'VALID',
                                      dimension_numbers=dn)
    mean = pw_out.mean(axis=(0, 2, 3), keepdims=True)
    var = ((pw_out - mean) ** 2).mean(axis=(0, 2, 3), keepdims=True)
    y = (pw_out - mean) / jnp.sqrt(var + BN_EPS)
    y = y * gamma[None, :, None, None] + beta[None, :, None, None]
    if sc_w is None:
        res = x
    else:
        res = lax.conv_general_dilated(x, sc_w, (1, 1), 'VALID', dimension_numbers=dn)
    return jnp.maximum(y + res, 0.0)


if __name__ == "__main__":
    B, Cin, Cout, H, W = 2, 4, 8, 16, 16

    key = jax.random.PRNGKey(0)
    kx, kdw, kpw, ksc = jax.random.split(key, 4)

    x = jax.random.normal(kx, (B, Cin, H, W), dtype=jnp.float32)
    # PyTorch weight layouts.
    dw_w = 0.2 * jax.random.normal(kdw, (Cin, 1, KH, KW), dtype=jnp.float32)
    pw_w = 0.3 * jax.random.normal(kpw, (Cout, Cin, 1, 1), dtype=jnp.float32)
    sc_w = 0.3 * jax.random.normal(ksc, (Cout, Cin, 1, 1), dtype=jnp.float32)
    gamma = jnp.ones((Cout,), dtype=jnp.float32)   # BatchNorm2d default init
    beta = jnp.zeros((Cout,), dtype=jnp.float32)

    run = jax.jit(residual_dsc_block)
    out = jax.block_until_ready(run(x, dw_w, pw_w, sc_w, gamma, beta))
    ref = jax.block_until_ready(reference_jax(x, dw_w, pw_w, sc_w, gamma, beta))

    assert out.shape == (B, Cout, H, W)
    assert jnp.allclose(out, ref, atol=1e-4, rtol=1e-4), "mismatch vs reference"

    print("KERNEL_OK")
</pallas_src>

<mosaic_0001>
module attributes {stable_mosaic.version = 11 : i64} {
  func.func @_pass2_kernel(%arg0: i32, %arg1: memref<1x256x128xf32, #tpu.memory_space<vmem>>, %arg2: memref<1x16x16x4xf32, #tpu.memory_space<vmem>>, %arg3: memref<2x128xf32, #tpu.memory_space<vmem>>, %arg4: memref<4x128xf32, #tpu.memory_space<vmem>>, %arg5: memref<1x128xf32, #tpu.memory_space<vmem>>, %arg6: memref<1x128xf32, #tpu.memory_space<vmem>>, %arg7: memref<1x256x128xf32, #tpu.memory_space<vmem>>) attributes {dimension_semantics = [#tpu.dimension_semantics<parallel>], iteration_bounds = array<i64: 2>, scalar_prefetch = 0 : i64, scratch_operands = 0 : i64, tpu.core_type = #tpu.core_type<tc>, window_params = [{transform_indices = @transform_0, window_bounds = array<i64: 1, 256, 128>}, {transform_indices = @transform_1, window_bounds = array<i64: 1, 16, 16, 4>}, {pipeline_mode = #tpu.pipeline_mode<synchronous>, transform_indices = @transform_2, window_bounds = array<i64: 2, 128>}, {pipeline_mode = #tpu.pipeline_mode<synchronous>, transform_indices = @transform_3, window_bounds = array<i64: 4, 128>}, {pipeline_mode = #tpu.pipeline_mode<synchronous>, transform_indices = @transform_4, window_bounds = array<i64: 1, 128>}, {pipeline_mode = #tpu.pipeline_mode<synchronous>, transform_indices = @transform_5, window_bounds = array<i64: 1, 128>}, {transform_indices = @transform_6, window_bounds = array<i64: 1, 256, 128>}]} {
    %c0 = arith.constant 0 : index
    %c0_0 = arith.constant 0 : index
    %c0_1 = arith.constant 0 : index
    %0 = vector.load %arg1[%c0, %c0_0, %c0_1] : memref<1x256x128xf32, #tpu.memory_space<vmem>>, vector<1x256x128xf32>
    %1 = vector.shape_cast %0 : vector<1x256x128xf32> to vector<256x128xf32>
    %c0_2 = arith.constant 0 : index
    %c0_3 = arith.constant 0 : index
    %c0_4 = arith.constant 0 : index
    %c0_5 = arith.constant 0 : index
    %2 = vector.load %arg2[%c0_2, %c0_3, %c0_4, %c0_5] : memref<1x16x16x4xf32, #tpu.memory_space<vmem>>, vector<1x16x16x4xf32>
    %3 = vector.shape_cast %2 : vector<1x16x16x4xf32> to vector<16x16x4xf32>
    %4 = vector.shape_cast %3 : vector<16x16x4xf32> to vector<256x4xf32>
    %c0_6 = arith.constant 0 : index
    %c0_7 = arith.constant 0 : index
    %5 = vector.load %arg4[%c0_6, %c0_7] : memref<4x128xf32, #tpu.memory_space<vmem>>, vector<4x128xf32>
    %cst = arith.constant dense<0.000000e+00> : vector<256x128xf32>
    %6 = tpu.matmul %4, %5, %cst {dimension_numbers = #tpu.dot_dimension_numbers<[1], [0], [0], [1], [0, 0, 1, 1], [], []>} : vector<256x4xf32>, vector<4x128xf32>, vector<256x128xf32> -> vector<256x128xf32>
    %c0_8 = arith.constant 0 : index
    %c0_9 = arith.constant 0 : index
    %7 = vector.load %arg3[%c0_8, %c0_9] : memref<2x128xf32, #tpu.memory_space<vmem>>, vector<1x128xf32>
    %cst_10 = arith.constant 0.001953125 : f32
    %8 = vector.broadcast %cst_10 : f32 to vector<1x128xf32>
    %9 = arith.mulf %7, %8 : vector<1x128xf32>
    %c1 = arith.constant 1 : index
    %c0_11 = arith.constant 0 : index
    %10 = vector.load %arg3[%c1, %c0_11] : memref<2x128xf32, #tpu.memory_space<vmem>>, vector<1x128xf32>
    %cst_12 = arith.constant 0.001953125 : f32
    %11 = vector.broadcast %cst_12 : f32 to vector<1x128xf32>
    %12 = arith.mulf %10, %11 : vector<1x128xf32>
    %13 = arith.mulf %9, %9 : vector<1x128xf32>
    %14 = arith.subf %12, %13 : vector<1x128xf32>
    %cst_13 = arith.constant 0.000000e+00 : f32
    %15 = vector.broadcast %cst_13 : f32 to vector<1x128xf32>
    %16 = arith.maximumf %14, %15 : vector<1x128xf32>
    %cst_14 = arith.constant 9.99999974E-6 : f32
    %17 = vector.broadcast %cst_14 : f32 to vector<1x128xf32>
    %18 = arith.addf %16, %17 : vector<1x128xf32>
    %19 = math.rsqrt %18 : vector<1x128xf32>
    %c0_15 = arith.constant 0 : index
    %c0_16 = arith.constant 0 : index
    %20 = vector.load %arg5[%c0_15, %c0_16] : memref<1x128xf32, #tpu.memory_space<vmem>>, vector<1x128xf32>
    %21 = arith.mulf %20, %19 : vector<1x128xf32>
    %c0_17 = arith.constant 0 : index
    %c0_18 = arith.constant 0 : index
    %22 = vector.load %arg6[%c0_17, %c0_18] : memref<1x128xf32, #tpu.memory_space<vmem>>, vector<1x128xf32>
    %23 = arith.mulf %9, %21 : vector<1x128xf32>
    %24 = arith.subf %22, %23 : vector<1x128xf32>
    %25 = vector.broadcast %21 : vector<1x128xf32> to vector<256x128xf32>
    %26 = arith.mulf %1, %25 : vector<256x128xf32>
    %27 = vector.broadcast %24 : vector<1x128xf32> to vector<256x128xf32>
    %28 = arith.addf %26, %27 : vector<256x128xf32>
    %29 = arith.addf %28, %6 : vector<256x128xf32>
    %cst_19 = arith.constant 0.000000e+00 : f32
    %30 = vector.broadcast %cst_19 : f32 to vector<256x128xf32>
    %31 = arith.maximumf %29, %30 : vector<256x128xf32>
    %c0_20 = arith.constant 0 : index
    %c0_21 = arith.constant 0 : index
    %c0_22 = arith.constant 0 : index
    %32 = vector.load %arg7[%c0_20, %c0_21, %c0_22] : memref<1x256x128xf32, #tpu.memory_space<vmem>>, vector<1x256x128xf32>
    %33 = vector.shape_cast %32 : vector<1x256x128xf32> to vector<256x128xf32>
    %34 = vector.shape_cast %31 : vector<256x128xf32> to vector<1x256x128xf32>
    tpu.vector_store %arg7[%c0_20, %c0_21, %c0_22], %34 {strides = array<i32>} : memref<1x256x128xf32, #tpu.memory_space<vmem>>, vector<1x256x128xf32>,
    return
  }
  func.func @transform_0(%arg0: i32) -> (i32, i32, i32) {
    %c0_i32 = arith.constant 0 : i32
    %c0_i32_0 = arith.constant 0 : i32
    %c0_i32_1 = arith.constant 0 : i32
    return %arg0, %c0_i32, %c0_i32_0 : i32, i32, i32
  }
  func.func @transform_1(%arg0: i32) -> (i32, i32, i32, i32) {
    %c0_i32 = arith.constant 0 : i32
    %c0_i32_0 = arith.constant 0 : i32
    %c0_i32_1 = arith.constant 0 : i32
    %c0_i32_2 = arith.constant 0 : i32
    return %arg0, %c0_i32, %c0_i32_0, %c0_i32_1 : i32, i32, i32, i32
  }
  func.func @transform_2(%arg0: i32) -> (i32, i32) {
    %c0_i32 = arith.constant 0 : i32
    %c0_i32_0 = arith.constant 0 : i32
    %c0_i32_1 = arith.constant 0 : i32
    return %c0_i32, %c0_i32_0 : i32, i32
  }
  func.func @transform_3(%arg0: i32) -> (i32, i32) {
    %c0_i32 = arith.constant 0 : i32
    %c0_i32_0 = arith.constant 0 : i32
    %c0_i32_1 = arith.constant 0 : i32
    return %c0_i32, %c0_i32_0 : i32, i32
  }
  func.func @transform_4(%arg0: i32) -> (i32, i32) {
    %c0_i32 = arith.constant 0 : i32
    %c0_i32_0 = arith.constant 0 : i32
    %c0_i32_1 = arith.constant 0 : i32
    return %c0_i32, %c0_i32_0 : i32, i32
  }
  func.func @transform_5(%arg0: i32) -> (i32, i32) {
    %c0_i32 = arith.constant 0 : i32
    %c0_i32_0 = arith.constant 0 : i32
    %c0_i32_1 = arith.constant 0 : i32
    return %c0_i32, %c0_i32_0 : i32, i32
  }
  func.func @transform_6(%arg0: i32) -> (i32, i32, i32) {
    %c0_i32 = arith.constant 0 : i32
    %c0_i32_0 = arith.constant 0 : i32
    %c0_i32_1 = arith.constant 0 : i32
    return %arg0, %c0_i32, %c0_i32_0 : i32, i32, i32
  }
}

module attributes {stable_mosaic.version = 11 : i64} {
  func.func @_pass1_kernel(%arg0: i32, %arg1: memref<1x16x16x4xf32, #tpu.memory_space<vmem>>, %arg2: memref<9x4xf32, #tpu.memory_space<vmem>>, %arg3: memref<4x128xf32, #tpu.memory_space<vmem>>, %arg4: memref<1x256x128xf32, #tpu.memory_space<vmem>>, %arg5: memref<2x128xf32, #tpu.memory_space<vmem>>, %arg6: memref<18x18x4xf32, #tpu.memory_space<vmem>>) attributes {dimension_semantics = [#tpu.dimension_semantics<arbitrary>], iteration_bounds = array<i64: 2>, scalar_prefetch = 0 : i64, scratch_operands = 1 : i64, tpu.core_type = #tpu.core_type<tc>, window_params = [{transform_indices = @transform_0, window_bounds = array<i64: 1, 16, 16, 4>}, {pipeline_mode = #tpu.pipeline_mode<synchronous>, transform_indices = @transform_1, window_bounds = array<i64: 9, 4>}, {pipeline_mode = #tpu.pipeline_mode<synchronous>, transform_indices = @transform_2, window_bounds = array<i64: 4, 128>}, {transform_indices = @transform_3, window_bounds = array<i64: 1, 256, 128>}, {pipeline_mode = #tpu.pipeline_mode<synchronous>, transform_indices = @transform_4, window_bounds = array<i64: 2, 128>}]} {
    %c0_i32 = arith.constant 0 : i32
    %0 = arith.cmpi eq, %arg0, %c0_i32 : i32
    %1 = arith.extui %0 : i1 to i32
    %c0_i32_0 = arith.constant 0 : i32
    %2 = arith.cmpi ne, %1, %c0_i32_0 : i32
    scf.if %2 {
      %cst_45 = arith.constant 0.000000e+00 : f32
      %84 = vector.broadcast %cst_45 : f32 to vector<2x128xf32>
      %c0_46 = arith.constant 0 : index
      %c0_47 = arith.constant 0 : index
      %85 = vector.load %arg5[%c0_46, %c0_47] : memref<2x128xf32, #tpu.memory_space<vmem>>, vector<2x128xf32>
      tpu.vector_store %arg5[%c0_46, %c0_47], %84 {strides = array<i32>} : memref<2x128xf32, #tpu.memory_space<vmem>>, vector<2x128xf32>,
      %cst_48 = arith.constant 0.000000e+00 : f32
      %86 = vector.broadcast %cst_48 : f32 to vector<18x18x4xf32>
      %c0_49 = arith.constant 0 : index
      %c0_50 = arith.constant 0 : index
      %c0_51 = arith.constant 0 : index
      %87 = vector.load %arg6[%c0_49, %c0_50, %c0_51] : memref<18x18x4xf32, #tpu.memory_space<vmem>>, vector<18x18x4xf32>
      tpu.vector_store %arg6[%c0_49, %c0_50, %c0_51], %86 {strides = array<i32>} : memref<18x18x4xf32, #tpu.memory_space<vmem>>, vector<18x18x4xf32>,
    } else {
    }
    %c0 = arith.constant 0 : index
    %c0_1 = arith.constant 0 : index
    %c0_2 = arith.constant 0 : index
    %c0_3 = arith.constant 0 : index
    %3 = vector.load %arg1[%c0, %c0_1, %c0_2, %c0_3] : memref<1x16x16x4xf32, #tpu.memory_space<vmem>>, vector<1x16x16x4xf32>
    %4 = vector.shape_cast %3 : vector<1x16x16x4xf32> to vector<16x16x4xf32>
    %c1 = arith.constant 1 : index
    %c1_4 = arith.constant 1 : index
    %c0_5 = arith.constant 0 : index
    %5 = vector.load %arg6[%c1, %c1_4, %c0_5] : memref<18x18x4xf32, #tpu.memory_space<vmem>>, vector<16x16x4xf32>
    tpu.vector_store %arg6[%c1, %c1_4, %c0_5], %4 {strides = array<i32>} : memref<18x18x4xf32, #tpu.memory_space<vmem>>, vector<16x16x4xf32>,
    %c0_6 = arith.constant 0 : index
    %c0_7 = arith.constant 0 : index
    %6 = vector.load %arg2[%c0_6, %c0_7] : memref<9x4xf32, #tpu.memory_space<vmem>>, vector<9x4xf32>
    %c0_8 = arith.constant 0 : index
    %c0_9 = arith.constant 0 : index
    %c0_10 = arith.constant 0 : index
    %7 = vector.load %arg6[%c0_8, %c0_9, %c0_10] : memref<18x18x4xf32, #tpu.memory_space<vmem>>, vector<16x16x4xf32>
    %8 = vector.extract_strided_slice %6 {offsets = [0, 0], sizes = [1, 4], strides = [1, 1]} : vector<9x4xf32> to vector<1x4xf32>
    %9 = vector.shape_cast %8 : vector<1x4xf32> to vector<4xf32>
    %10 = vector.shape_cast %9 : vector<4xf32> to vector<1x1x4xf32>
    %11 = vector.broadcast %10 : vector<1x1x4xf32> to vector<16x16x4xf32>
    %12 = arith.mulf %7, %11 : vector<16x16x4xf32>
    %c0_11 = arith.constant 0 : index
    %c1_12 = arith.constant 1 : index
    %c0_13 = arith.constant 0 : index
    %13 = vector.load %arg6[%c0_11, %c1_12, %c0_13] : memref<18x18x4xf32, #tpu.memory_space<vmem>>, vector<16x16x4xf32>
    %14 = vector.extract_strided_slice %6 {offsets = [1, 0], sizes = [1, 4], strides = [1, 1]} : vector<9x4xf32> to vector<1x4xf32>
    %15 = vector.shape_cast %14 : vector<1x4xf32> to vector<4xf32>
    %16 = vector.shape_cast %15 : vector<4xf32> to vector<1x1x4xf32>
    %17 = vector.broadcast %16 : vector<1x1x4xf32> to vector<16x16x4xf32>
    %18 = arith.mulf %13, %17 : vector<16x16x4xf32>
    %19 = arith.addf %12, %18 : vector<16x16x4xf32>
    %c0_14 = arith.constant 0 : index
    %c2 = arith.constant 2 : index
    %c0_15 = arith.constant 0 : index
    %20 = vector.load %arg6[%c0_14, %c2, %c0_15] : memref<18x18x4xf32, #tpu.memory_space<vmem>>, vector<16x16x4xf32>
    %21 = vector.extract_strided_slice %6 {offsets = [2, 0], sizes = [1, 4], strides = [1, 1]} : vector<9x4xf32> to vector<1x4xf32>
    %22 = vector.shape_cast %21 : vector<1x4xf32> to vector<4xf32>
    %23 = vector.shape_cast %22 : vector<4xf32> to vector<1x1x4xf32>
    %24 = vector.broadcast %23 : vector<1x1x4xf32> to vector<16x16x4xf32>
    %25 = arith.mulf %20, %24 : vector<16x16x4xf32>
    %26 = arith.addf %19, %25 : vector<16x16x4xf32>
    %c1_16 = arith.constant 1 : index
    %c0_17 = arith.constant 0 : index
    %c0_18 = arith.constant 0 : index
    %27 = vector.load %arg6[%c1_16, %c0_17, %c0_18] : memref<18x18x4xf32, #tpu.memory_space<vmem>>, vector<16x16x4xf32>
    %28 = vector.extract_strided_slice %6 {offsets = [3, 0], sizes = [1, 4], strides = [1, 1]} : vector<9x4xf32> to vector<1x4xf32>
    %29 = vector.shape_cast %28 : vector<1x4xf32> to vector<4xf32>
    %30 = vector.shape_cast %29 : vector<4xf32> to vector<1x1x4xf32>
    %31 = vector.broadcast %30 : vector<1x1x4xf32> to vector<16x16x4xf32>
    %32 = arith.mulf %27, %31 : vector<16x16x4xf32>
    %33 = arith.addf %26, %32 : vector<16x16x4xf32>
    %c1_19 = arith.constant 1 : index
    %c1_20 = arith.constant 1 : index
    %c0_21 = arith.constant 0 : index
    %34 = vector.load %arg6[%c1_19, %c1_20, %c0_21] : memref<18x18x4xf32, #tpu.memory_space<vmem>>, vector<16x16x4xf32>
    %35 = vector.extract_strided_slice %6 {offsets = [4, 0], sizes = [1, 4], strides = [1, 1]} : vector<9x4xf32> to vector<1x4xf32>
    %36 = vector.shape_cast %35 : vector<1x4xf32> to vector<4xf32>
    %37 = vector.shape_cast %36 : vector<4xf32> to vector<1x1x4xf32>
    %38 = vector.broadcast %37 : vector<1x1x4xf32> to vector<16x16x4xf32>
    %39 = arith.mulf %34, %38 : vector<16x16x4xf32>
    %40 = arith.addf %33, %39 : vector<16x16x4xf32>
    %c1_22 = arith.constant 1 : index
    %c2_23 = arith.constant 2 : index
    %c0_24 = arith.constant 0 : index
    %41 = vector.load %arg6[%c1_22, %c2_23, %c0_24] : memref<18x18x4xf32, #tpu.memory_space<vmem>>, vector<16x16x4xf32>
    %42 = vector.extract_strided_slice %6 {offsets = [5, 0], sizes = [1, 4], strides = [1, 1]} : vector<9x4xf32> to vector<1x4xf32>
    %43 = vector.shape_cast %42 : vector<1x4xf32> to vector<4xf32>
    %44 = vector.shape_cast %43 : vector<4xf32> to vector<1x1x4xf32>
    %45 = vector.broadcast %44 : vector<1x1x4xf32> to vector<16x16x4xf32>
    %46 = arith.mulf %41, %45 : vector<16x16x4xf32>
    %47 = arith.addf %40, %46 : vector<16x16x4xf32>
    %c2_25 = arith.constant 2 : index
    %c0_26 = arith.constant 0 : index
    %c0_27 = arith.constant 0 : index
    %48 = vector.load %arg6[%c2_25, %c0_26, %c0_27] : memref<18x18x4xf32, #tpu.memory_space<vmem>>, vector<16x16x4xf32>
    %49 = vector.extract_strided_slice %6 {offsets = [6, 0], sizes = [1, 4], strides = [1, 1]} : vector<9x4xf32> to vector<1x4xf32>
    %50 = vector.shape_cast %49 : vector<1x4xf32> to vector<4xf32>
    %51 = vector.shape_cast %50 : vector<4xf32> to vector<1x1x4xf32>
    %52 = vector.broadcast %51 : vector<1x1x4xf32> to vector<16x16x4xf32>
    %53 = arith.mulf %48, %52 : vector<16x16x4xf32>
    %54 = arith.addf %47, %53 : vector<16x16x4xf32>
    %c2_28 = arith.constant 2 : index
    %c1_29 = arith.constant 1 : index
    %c0_30 = arith.constant 0 : index
    %55 = vector.load %arg6[%c2_28, %c1_29, %c0_30] : memref<18x18x4xf32, #tpu.memory_space<vmem>>, vector<16x16x4xf32>
    %56 = vector.extract_strided_slice %6 {offsets = [7, 0], sizes = [1, 4], strides = [1, 1]} : vector<9x4xf32> to vector<1x4xf32>
    %57 = vector.shape_cast %56 : vector<1x4xf32> to vector<4xf32>
    %58 = vector.shape_cast %57 : vector<4xf32> to vector<1x1x4xf32>
    %59 = vector.broadcast %58 : vector<1x1x4xf32> to vector<16x16x4xf32>
    %60 = arith.mulf %55, %59 : vector<16x16x4xf32>
    %61 = arith.addf %54, %60 : vector<16x16x4xf32>
    %c2_31 = arith.constant 2 : index
    %c2_32 = arith.constant 2 : index
    %c0_33 = arith.constant 0 : index
    %62 = vector.load %arg6[%c2_31, %c2_32, %c0_33] : memref<18x18x4xf32, #tpu.memory_space<vmem>>, vector<16x16x4xf32>
    %63 = vector.extract_strided_slice %6 {offsets = [8, 0], sizes = [1, 4], strides = [1, 1]} : vector<9x4xf32> to vector<1x4xf32>
    %64 = vector.shape_cast %63 : vector<1x4xf32> to vector<4xf32>
    %65 = vector.shape_cast %64 : vector<4xf32> to vector<1x1x4xf32>
    %66 = vector.broadcast %65 : vector<1x1x4xf32> to vector<16x16x4xf32>
    %67 = arith.mulf %62, %66 : vector<16x16x4xf32>
    %68 = arith.addf %61, %67 : vector<16x16x4xf32>
    %69 = vector.shape_cast %68 : vector<16x16x4xf32> to vector<256x4xf32>
    %c0_34 = arith.constant 0 : index
    %c0_35 = arith.constant 0 : index
    %70 = vector.load %arg3[%c0_34, %c0_35] : memref<4x128xf32, #tpu.memory_space<vmem>>, vector<4x128xf32>
    %cst = arith.constant dense<0.000000e+00> : vector<256x128xf32>
    %71 = tpu.matmul %69, %70, %cst {dimension_numbers = #tpu.dot_dimension_numbers<[1], [0], [0], [1], [0, 0, 1, 1], [], []>} : vector<256x4xf32>, vector<4x128xf32>, vector<256x128xf32> -> vector<256x128xf32>
    %c0_36 = arith.constant 0 : index
    %c0_37 = arith.constant 0 : index
    %c0_38 = arith.constant 0 : index
    %72 = vector.load %arg4[%c0_36, %c0_37, %c0_38] : memref<1x256x128xf32, #tpu.memory_space<vmem>>, vector<1x256x128xf32>
    %73 = vector.shape_cast %72 : vector<1x256x128xf32> to vector<256x128xf32>
    %74 = vector.shape_cast %71 : vector<256x128xf32> to vector<1x256x128xf32>
    tpu.vector_store %arg4[%c0_36, %c0_37, %c0_38], %74 {strides = array<i32>} : memref<1x256x128xf32, #tpu.memory_space<vmem>>, vector<1x256x128xf32>,
    %cst_39 = arith.constant dense<0.000000e+00> : vector<128xf32>
    %75 = vector.multi_reduction <add>, %71, %cst_39 [0] : vector<256x128xf32> to vector<128xf32>
    %76 = vector.shape_cast %75 : vector<128xf32> to vector<1x128xf32>
    %77 = arith.mulf %71, %71 : vector<256x128xf32>
    %cst_40 = arith.constant dense<0.000000e+00> : vector<128xf32>
    %78 = vector.multi_reduction <add>, %77, %cst_40 [0] : vector<256x128xf32> to vector<128xf32>
    %79 = vector.shape_cast %78 : vector<128xf32> to vector<1x128xf32>
    %c0_41 = arith.constant 0 : index
    %c0_42 = arith.constant 0 : index
    %80 = vector.load %arg5[%c0_41, %c0_42] : memref<2x128xf32, #tpu.memory_space<vmem>>, vector<2x128xf32>
    %81 = tpu.concatenate %76, %79 in 0 : vector<1x128xf32>, vector<1x128xf32> -> vector<2x128xf32>
    %82 = arith.addf %80, %81 : vector<2x128xf32>
    %c0_43 = arith.constant 0 : index
    %c0_44 = arith.constant 0 : index
    %83 = vector.load %arg5[%c0_43, %c0_44] : memref<2x128xf32, #tpu.memory_space<vmem>>, vector<2x128xf32>
    tpu.vector_store %arg5[%c0_43, %c0_44], %82 {strides = array<i32>} : memref<2x128xf32, #tpu.memory_space<vmem>>, vector<2x128xf32>,
    return
  }
  func.func @transform_0(%arg0: i32) -> (i32, i32, i32, i32) {
    %c0_i32 = arith.constant 0 : i32
    %c0_i32_0 = arith.constant 0 : i32
    %c0_i32_1 = arith.constant 0 : i32
    %c0_i32_2 = arith.constant 0 : i32
    return %arg0, %c0_i32, %c0_i32_0, %c0_i32_1 : i32, i32, i32, i32
  }
  func.func @transform_1(%arg0: i32) -> (i32, i32) {
    %c0_i32 = arith.constant 0 : i32
    %c0_i32_0 = arith.constant 0 : i32
    %c0_i32_1 = arith.constant 0 : i32
    return %c0_i32, %c0_i32_0 : i32, i32
  }
  func.func @transform_2(%arg0: i32) -> (i32, i32) {
    %c0_i32 = arith.constant 0 : i32
    %c0_i32_0 = arith.constant 0 : i32
    %c0_i32_1 = arith.constant 0 : i32
    return %c0_i32, %c0_i32_0 : i32, i32
  }
  func.func @transform_3(%arg0: i32) -> (i32, i32, i32) {
    %c0_i32 = arith.constant 0 : i32
    %c0_i32_0 = arith.constant 0 : i32
    %c0_i32_1 = arith.constant 0 : i32
    return %arg0, %c0_i32, %c0_i32_0 : i32, i32, i32
  }
  func.func @transform_4(%arg0: i32) -> (i32, i32) {
    %c0_i32 = arith.constant 0 : i32
    %c0_i32_0 = arith.constant 0 : i32
    %c0_i32_1 = arith.constant 0 : i32
    return %c0_i32, %c0_i32_0 : i32, i32
  }
}

</mosaic_0001>

<bundles_post_ra>
// kernel: residual_dsc_block.3
= control target key start
LH: loop header
LB: loop body
LE: loop exit
PB: predicated region body
PF: predicated region fallthrough
CT: control target
= control target key end

     0   :  { %s912_s21 = smov 0   ;;  %s1154_s0 = inlined_call_operand.vmem [shape: f32[2,256,128], index: 0, kind: input, shape index: {}]   ;;  %s1155_s1 = inlined_call_operand.vmem [shape: f32[2,16,16,4], index: 1, kind: input, shape index: {}]   ;;  %s1156_s2 = inlined_call_operand.vmem [shape: f32[2,128], index: 2, kind: input, shape index: {}]   ;;  %s1157_s3 = inlined_call_operand.vmem [shape: f32[4,128], index: 3, kind: input, shape index: {}]   ;;  %s1158_s4 = inlined_call_operand.vmem [shape: f32[1,128], index: 4, kind: input, shape index: {}]   ;;  %s1159_s5 = inlined_call_operand.vmem [shape: f32[1,128], index: 5, kind: input, shape index: {}]   ;;  %s1160_s6 = inlined_call_operand.vmem [shape: f32[2,256,128], index: 6, kind: output, shape index: {}]  }
   0x1 LB: > { %s807_s22 = sadd.s32 4294967295, %s875_s21   ;;  %p811_p0 = scmp.ge.s32.totalorder %s875_s21, 1  ;;  %s875_s21 = sphi %s912_s21, %s16_s21  }
   0x2   : > { %p222_p1 = scmp.lt.s32.totalorder %s875_s21, 3 }
   0x4   : > { %p223_p2 = pnand %p811_p0, %p222_p1 }
   0x5   : > { %p257_p3 = scmp.lt.s32.totalorder (!%p223_p2), %s807_s22, 1 }
   0x6   : > { %226 = sbr.rel (%p223_p2) target bundleno = 209 (0xd1), region = 44 }
   0xb   : > { %v336_v0 = vld [vmem:[%s1157_s3] sm:$0xf]  ;;  %vm434_vm0 = vcmask 1043456   ;;  %s1162_s22 = smov (!%p257_p3, %s807_s22), 1  ;;  %vm337_vm1 = vcmask 31744  }
   0xc   : > { %857 = vmatpush.msk.msra.mxu2 %vm434_vm0, %v336_v0  ;;  %858 = vmatpush.msk.msra.mxu3 %vm434_vm0, %v336_v0  ;;  %s923_s25 = sshll.u32 %s1162_s22, 8  ;;  %v551_v33 = vld [vmem:[%s1156_s2] sm:$0x1]  ;;  %v553_v35 = vld [vmem:[%s1156_s2 + $0x1] sm:$0x1] }
   0xd   : > { %818 = vmatpush.msk.msra.mxu0 %vm434_vm0, %v336_v0  ;;  %856 = vmatpush.msk.msra.mxu1 %vm434_vm0, %v336_v0  ;;  %s929_s28 = scalar_lea.vmem %s1155_s1, %s923_s25  ;;  %v552_v34 = vmul.f32 0.001953125, %v551_v33  ;;  %v554_v36 = vmul.f32 0.001953125, %v553_v35  ;;  %v569_v48 = vld [vmem:[%s1158_s4] sm:$0x1]  ;;  %s1011_s15 = scalar_lea.vmem %s1154_s0, %s923_s25 }
   0xe   : > { %v320_v1 = vld [vmem:[%s929_s28 + $0x80] sm:$0xff]  ;;  %v321_v5 = vld [vmem:[%s929_s28 + $0x88] sm:$0xff]  ;;  %v322_v9 = vld [vmem:[%s929_s28 + $0x90] sm:$0xff]  ;;  %s1035_s18 = scalar_lea.vmem %s1160_s6, %s923_s25 }
   0xf   : > { %v328_v2 = vld [vmem:[%s929_s28 + $0xc0] sm:$0xff]  ;;  %835 = vmatmul.msk.f32.vlgmr.msra.gmra.mxu2 %vm337_vm1, %v320_v1  ;;  %v329_v6 = vld [vmem:[%s929_s28 + $0xc8] sm:$0xff]  ;;  %v330_v10 = vld [vmem:[%s929_s28 + $0xd0] sm:$0xff]  ;;  %v555_v37 = vmul.f32 %v552_v34, %v552_v34 }
  0x10   : > { %v304_v3 = vld [vmem:[%s929_s28] sm:$0xff]  ;;  %843 = vmatmul.msk.f32.vlgmr.msra.gmra.mxu3 %vm337_vm1, %v328_v2  ;;  %v305_v7 = vld [vmem:[%s929_s28 + $0x8] sm:$0xff]  ;;  %v306_v11 = vld [vmem:[%s929_s28 + $0x10] sm:$0xff] }
  0x11   : > { %v312_v4 = vld [vmem:[%s929_s28 + $0x40] sm:$0xff]  ;;  %819 = vmatmul.msk.f32.vlgmr.msra.gmra.mxu0 %vm337_vm1, %v304_v3  ;;  %v313_v8 = vld [vmem:[%s929_s28 + $0x48] sm:$0xff]  ;;  %v314_v12 = vld [vmem:[%s929_s28 + $0x50] sm:$0xff]  ;;  %v556_v38 = vsub.f32 %v554_v36, %v555_v37 }
  0x12   : > { %827 = vmatmul.msk.f32.vlgmr.msra.gmra.mxu1 %vm337_vm1, %v312_v4  ;;  %v323_v13 = vld [vmem:[%s929_s28 + $0x98] sm:$0xff]  ;;  %v324_v17 = vld [vmem:[%s929_s28 + $0xa0] sm:$0xff]  ;;  %v325_v21 = vld [vmem:[%s929_s28 + $0xa8] sm:$0xff] }
  0x13   : > { %v331_v14 = vld [vmem:[%s929_s28 + $0xd8] sm:$0xff]  ;;  %v332_v18 = vld [vmem:[%s929_s28 + $0xe0] sm:$0xff]  ;;  %v333_v22 = vld [vmem:[%s929_s28 + $0xe8] sm:$0xff]  ;;  %v557_v39 = vmax.f32 %v556_v38, 0.0 }
  0x14   : > { %v307_v15 = vld [vmem:[%s929_s28 + $0x18] sm:$0xff]  ;;  %v308_v19 = vld [vmem:[%s929_s28 + $0x20] sm:$0xff]  ;;  %v309_v23 = vld [vmem:[%s929_s28 + $0x28] sm:$0xff] }
  0x15   : > { %v315_v16 = vld [vmem:[%s929_s28 + $0x58] sm:$0xff]  ;;  %v316_v20 = vld [vmem:[%s929_s28 + $0x60] sm:$0xff]  ;;  %v317_v24 = vld [vmem:[%s929_s28 + $0x68] sm:$0xff]  ;;  %v558_v40 = vadd.f32 1e-05, %v557_v39 }
  0x16   : > { %v326_v25 = vld [vmem:[%s929_s28 + $0xb0] sm:$0xff]  ;;  %v327_v29 = vld [vmem:[%s929_s28 + $0xb8] sm:$0xff]  ;;  %v571_v51 = vld [vmem:[%s1159_s5] sm:$0x1] }
  0x17   : > { %836 = vmatmul.msk.f32.gmra.mxu2 %vm337_vm1, %v321_v5  ;;  %v334_v26 = vld [vmem:[%s929_s28 + $0xf0] sm:$0xff]  ;;  %v335_v30 = vld [vmem:[%s929_s28 + $0xf8] sm:$0xff]  ;;  %867 = vrsqrt.f32 %v558_v40  ;;  %vm565_vm2 = vweird.f32 %v558_v40  ;;  %v272_v54 = vld [vmem:[%s1011_s15] sm:$0xff] }
  0x18   : > { %844 = vmatmul.msk.f32.gmra.mxu3 %vm337_vm1, %v329_v6  ;;  %v310_v27 = vld [vmem:[%s929_s28 + $0x30] sm:$0xff]  ;;  %v311_v31 = vld [vmem:[%s929_s28 + $0x38] sm:$0xff]  ;;  %v280_v55 = vld [vmem:[%s1011_s15 + $0x40] sm:$0xff] }
  0x19   : > { %820 = vmatmul.msk.f32.gmra.mxu0 %vm337_vm1, %v305_v7  ;;  %v318_v28 = vld [vmem:[%s929_s28 + $0x70] sm:$0xff]  ;;  %v319_v32 = vld [vmem:[%s929_s28 + $0x78] sm:$0xff]  ;;  %v288_v59 = vld [vmem:[%s1011_s15 + $0x80] sm:$0xff] }
  0x1a   : > { %828 = vmatmul.msk.f32.gmra.mxu1 %vm337_vm1, %v313_v8  ;;  %v296_v60 = vld [vmem:[%s1011_s15 + $0xc0] sm:$0xff]  ;;  %v273_v1 = vld [vmem:[%s1011_s15 + $0x8] sm:$0xff]  ;;  %v290_v37 = vld [vmem:[%s1011_s15 + $0x90] sm:$0xff] }
  0x1b   : > { %v281_v2 = vld [vmem:[%s1011_s15 + $0x48] sm:$0xff]  ;;  %v298_v38 = vld [vmem:[%s1011_s15 + $0xd0] sm:$0xff] }
  0x1d   : > { %v868_v41 = vpop.eup %867 }
  0x1e   : > { %v560_v42 = vmul.f32 %v868_v41, %v558_v40  ;;  %vm566_vm3 = vweird.f32 %v868_v41 }
  0x1f   : > { %837 = vmatmul.msk.f32.gmra.mxu2 %vm337_vm1, %v322_v9  ;;  %vm567_vm4 = vmor %vm565_vm2, %vm566_vm3 }
  0x20   : > { %845 = vmatmul.msk.f32.gmra.mxu3 %vm337_vm1, %v330_v10  ;;  %v561_v43 = vmul.f32 %v868_v41, %v560_v42 }
  0x21   : > { %821 = vmatmul.msk.f32.gmra.mxu0 %vm337_vm1, %v306_v11 }
  0x22   : > { %829 = vmatmul.msk.f32.gmra.mxu1 %vm337_vm1, %v314_v12  ;;  %v562_v44 = vmul.f32 0.5, %v561_v43 }
  0x24   : > { %v563_v45 = vsub.f32 1.5, %v562_v44 }
  0x26   : > { %v564_v46 = vmul.f32 %v868_v41, %v563_v45 }
  0x27   : > { %838 = vmatmul.msk.f32.gmra.mxu2 %vm337_vm1, %v323_v13  ;;  %v289_v13 = vld [vmem:[%s1011_s15 + $0x88] sm:$0xff] }
  0x28   : > { %846 = vmatmul.msk.f32.gmra.mxu3 %vm337_vm1, %v331_v14  ;;  %v568_v47 = vsel %vm567_vm4, %v868_v41, %v564_v46  ;;  %v297_v14 = vld [vmem:[%s1011_s15 + $0xc8] sm:$0xff] }
  0x29   : > { %822 = vmatmul.msk.f32.gmra.mxu0 %vm337_vm1, %v307_v15  ;;  %v570_v49 = vmul.f32 %v569_v48, %v568_v47  ;;  %v275_v47 = vld [vmem:[%s1011_s15 + $0x18] sm:$0xff] }
  0x2a   : > { %830 = vmatmul.msk.f32.gmra.mxu1 %vm337_vm1, %v315_v16  ;;  %v283_v48 = vld [vmem:[%s1011_s15 + $0x58] sm:$0xff] }
  0x2b   : > { %v572_v50 = vmul.f32 %v570_v49, %v552_v34  ;;  %v1013_v53 = vperm.slane %v570_v49, 0 }
  0x2d   : > { %v573_v52 = vsub.f32 %v571_v51, %v572_v50  ;;  %v577_v56 = vmul.f32 %v1013_v53, %v272_v54  ;;  %v585_v58 = vmul.f32 %v1013_v53, %v280_v55  ;;  %v593_v63 = vmul.f32 %v1013_v53, %v288_v59 }
  0x2e   : > { %v601_v0 = vmul.f32 %v1013_v53, %v296_v60  ;;  %v578_v7 = vmul.f32 %v1013_v53, %v273_v1  ;;  %v586_v8 = vmul.f32 %v1013_v53, %v281_v2  ;;  %v595_v45 = vmul.f32 %v1013_v53, %v290_v37 }
  0x2f   : > { %839 = vmatmul.msk.f32.gmra.mxu2 %vm337_vm1, %v324_v17  ;;  %v1018_v57 = vperm.slane %v573_v52, 0  ;;  %v603_v46 = vmul.f32 %v1013_v53, %v298_v38 }
  0x30   : > { %847 = vmatmul.msk.f32.gmra.mxu3 %vm337_vm1, %v332_v18 }
  0x31   : > { %823 = vmatmul.msk.f32.gmra.mxu0 %vm337_vm1, %v308_v19  ;;  %v612_v61 = vadd.f32 %v1018_v57, %v577_v56  ;;  %v620_v62 = vadd.f32 %v1018_v57, %v585_v58  ;;  %v628_v9 = vadd.f32 %v1018_v57, %v593_v63  ;;  %v636_v10 = vadd.f32 %v1018_v57, %v601_v0  ;;  %v291_v63 = vld [vmem:[%s1011_s15 + $0x98] sm:$0xff] }
  0x32   : > { %831 = vmatmul.msk.f32.gmra.mxu1 %vm337_vm1, %v316_v20  ;;  %v613_v17 = vadd.f32 %v1018_v57, %v578_v7  ;;  %v621_v18 = vadd.f32 %v1018_v57, %v586_v8  ;;  %v580_v56 = vmul.f32 %v1013_v53, %v275_v47  ;;  %v588_v58 = vmul.f32 %v1013_v53, %v283_v48  ;;  %v299_v0 = vld [vmem:[%s1011_s15 + $0xd8] sm:$0xff]  ;;  %v293_v47 = vld [vmem:[%s1011_s15 + $0xa8] sm:$0xff] }
  0x33   : > { %v630_v59 = vadd.f32 %v1018_v57, %v595_v45  ;;  %v638_v60 = vadd.f32 %v1018_v57, %v603_v46  ;;  %v596_v7 = vmul.f32 %v1013_v53, %v291_v63  ;;  %v604_v8 = vmul.f32 %v1013_v53, %v299_v0  ;;  %v301_v48 = vld [vmem:[%s1011_s15 + $0xe8] sm:$0xff] }
  0x37   : > { %840 = vmatmul.msk.f32.gmra.mxu2 %vm337_vm1, %v325_v21  ;;  %v594_v21 = vmul.f32 %v1013_v53, %v289_v13 }
  0x38   : > { %848 = vmatmul.msk.f32.gmra.mxu3 %vm337_vm1, %v333_v22  ;;  %v602_v22 = vmul.f32 %v1013_v53, %v297_v14 }
  0x39   : > { %824 = vmatmul.msk.f32.gmra.mxu0 %vm337_vm1, %v309_v23  ;;  %v274_v23 = vld [vmem:[%s1011_s15 + $0x10] sm:$0xff]  ;;  %v629_v33 = vadd.f32 %v1018_v57, %v594_v21 }
  0x3a   : > { %832 = vmatmul.msk.f32.gmra.mxu1 %vm337_vm1, %v317_v24  ;;  %v282_v24 = vld [vmem:[%s1011_s15 + $0x50] sm:$0xff]  ;;  %v637_v34 = vadd.f32 %v1018_v57, %v602_v22 }
  0x3f   : > { %841 = vmatmul.msk.f32.gmra.mxu2 %vm337_vm1, %v326_v25 }
  0x40   : > { %849 = vmatmul.msk.f32.gmra.mxu3 %vm337_vm1, %v334_v26 }
  0x41   : > { %825 = vmatmul.msk.f32.gmra.mxu0 %vm337_vm1, %v310_v27 }
  0x42   : > { %833 = vmatmul.msk.f32.gmra.mxu1 %vm337_vm1, %v318_v28 }
  0x47   : > { %842 = vmatmul.msk.f32.gmra.mxu2 %vm337_vm1, %v327_v29 }
  0x48   : > { %850 = vmatmul.msk.f32.gmra.mxu3 %vm337_vm1, %v335_v30 }
  0x49   : > { %826 = vmatmul.msk.f32.gmra.mxu0 %vm337_vm1, %v311_v31  ;;  %v579_v31 = vmul.f32 %v1013_v53, %v274_v23  ;;  %v292_v23 = vld [vmem:[%s1011_s15 + $0xa0] sm:$0xff] }
  0x4a   : > { %834 = vmatmul.msk.f32.gmra.mxu1 %vm337_vm1, %v319_v32  ;;  %v587_v32 = vmul.f32 %v1013_v53, %v282_v24  ;;  %v300_v24 = vld [vmem:[%s1011_s15 + $0xe0] sm:$0xff] }
  0x4b   : > { %v614_v41 = vadd.f32 %v1018_v57, %v579_v31  ;;  %v597_v31 = vmul.f32 %v1013_v53, %v292_v23 }
  0x4c   : > { %v622_v42 = vadd.f32 %v1018_v57, %v587_v32  ;;  %v605_v32 = vmul.f32 %v1013_v53, %v300_v24 }
  0x8e   : > { %v455_v3 = vpop.f32.mrf.mxu0 }
  0x8f   : > { %v479_v4 = vpop.f32.mrf.mxu1  ;;  %v644_v5 = vadd.f32 %v612_v61, %v455_v3  ;;  %v615_v3 = vadd.f32 %v1018_v57, %v580_v56  ;;  %v598_v56 = vmul.f32 %v1013_v53, %v293_v47 }
  0x90   : > { %v652_v6 = vadd.f32 %v620_v62, %v479_v4  ;;  %v623_v4 = vadd.f32 %v1018_v57, %v588_v58  ;;  %v606_v58 = vmul.f32 %v1013_v53, %v301_v48 }
  0x91   : > { %v676_v11 = vmax.f32 %v644_v5, 0.0 }
  0x92   : > { %v684_v12 = vmax.f32 %v652_v6, 0.0  ;;  %v503_v15 = vpop.f32.mrf.mxu2 }
  0x93   : > { %708 = vst [vmem:[%s1035_s18] sm:$0xff] %v676_v11  ;;  %v527_v16 = vpop.f32.mrf.mxu3  ;;  %v660_v19 = vadd.f32 %v628_v9, %v503_v15  ;;  %v276_v9 = vld [vmem:[%s1011_s15 + $0x20] sm:$0xff] }
  0x94   : > { %716 = vst [vmem:[%s1035_s18 + $0x40] sm:$0xff] %v684_v12  ;;  %v668_v20 = vadd.f32 %v636_v10, %v527_v16  ;;  %v284_v10 = vld [vmem:[%s1011_s15 + $0x60] sm:$0xff] }
  0x95   : > { %v692_v25 = vmax.f32 %v660_v19, 0.0  ;;  %v631_v19 = vadd.f32 %v1018_v57, %v596_v7 }
  0x96   : > { %v700_v26 = vmax.f32 %v668_v20, 0.0  ;;  %v458_v27 = vpop.f32.mrf.mxu0  ;;  %v639_v20 = vadd.f32 %v1018_v57, %v604_v8 }
  0x97   : > { %v482_v28 = vpop.f32.mrf.mxu1  ;;  %v645_v29 = vadd.f32 %v613_v17, %v458_v27  ;;  %724 = vst [vmem:[%s1035_s18 + $0x80] sm:$0xff] %v692_v25  ;;  %v581_v17 = vmul.f32 %v1013_v53, %v276_v9  ;;  %v294_v9 = vld [vmem:[%s1011_s15 + $0xb0] sm:$0xff] }
  0x98   : > { %v653_v30 = vadd.f32 %v621_v18, %v482_v28  ;;  %732 = vst [vmem:[%s1035_s18 + $0xc0] sm:$0xff] %v700_v26  ;;  %v589_v18 = vmul.f32 %v1013_v53, %v284_v10  ;;  %v302_v10 = vld [vmem:[%s1011_s15 + $0xf0] sm:$0xff] }
  0x99   : > { %v677_v35 = vmax.f32 %v645_v29, 0.0  ;;  %v616_v27 = vadd.f32 %v1018_v57, %v581_v17  ;;  %v599_v17 = vmul.f32 %v1013_v53, %v294_v9 }
  0x9a   : > { %v685_v36 = vmax.f32 %v653_v30, 0.0  ;;  %v506_v39 = vpop.f32.mrf.mxu2  ;;  %v624_v28 = vadd.f32 %v1018_v57, %v589_v18  ;;  %v607_v18 = vmul.f32 %v1013_v53, %v302_v10 }
  0x9b   : > { %709 = vst [vmem:[%s1035_s18 + $0x8] sm:$0xff] %v677_v35  ;;  %v530_v40 = vpop.f32.mrf.mxu3  ;;  %v661_v43 = vadd.f32 %v629_v33, %v506_v39  ;;  %v277_v33 = vld [vmem:[%s1011_s15 + $0x28] sm:$0xff] }
  0x9c   : > { %717 = vst [vmem:[%s1035_s18 + $0x48] sm:$0xff] %v685_v36  ;;  %v669_v44 = vadd.f32 %v637_v34, %v530_v40  ;;  %v285_v34 = vld [vmem:[%s1011_s15 + $0x68] sm:$0xff] }
  0x9d   : > { %v693_v49 = vmax.f32 %v661_v43, 0.0  ;;  %v632_v43 = vadd.f32 %v1018_v57, %v597_v31 }
  0x9e   : > { %v701_v50 = vmax.f32 %v669_v44, 0.0  ;;  %v461_v51 = vpop.f32.mrf.mxu0  ;;  %v640_v44 = vadd.f32 %v1018_v57, %v605_v32 }
  0x9f   : > { %v485_v52 = vpop.f32.mrf.mxu1  ;;  %v646_v54 = vadd.f32 %v614_v41, %v461_v51  ;;  %725 = vst [vmem:[%s1035_s18 + $0x88] sm:$0xff] %v693_v49  ;;  %v582_v41 = vmul.f32 %v1013_v53, %v277_v33  ;;  %v295_v33 = vld [vmem:[%s1011_s15 + $0xb8] sm:$0xff] }
  0xa0   : > { %v654_v55 = vadd.f32 %v622_v42, %v485_v52  ;;  %733 = vst [vmem:[%s1035_s18 + $0xc8] sm:$0xff] %v701_v50  ;;  %v590_v42 = vmul.f32 %v1013_v53, %v285_v34  ;;  %v303_v34 = vld [vmem:[%s1011_s15 + $0xf8] sm:$0xff] }
  0xa1   : > { %v678_v61 = vmax.f32 %v646_v54, 0.0  ;;  %v617_v51 = vadd.f32 %v1018_v57, %v582_v41  ;;  %v600_v41 = vmul.f32 %v1013_v53, %v295_v33 }
  0xa2   : > { %v686_v62 = vmax.f32 %v654_v55, 0.0  ;;  %v509_v1 = vpop.f32.mrf.mxu2  ;;  %v625_v52 = vadd.f32 %v1018_v57, %v590_v42  ;;  %v608_v42 = vmul.f32 %v1013_v53, %v303_v34 }
  0xa3   : > { %710 = vst [vmem:[%s1035_s18 + $0x10] sm:$0xff] %v678_v61  ;;  %v533_v2 = vpop.f32.mrf.mxu3  ;;  %v662_v5 = vadd.f32 %v630_v59, %v509_v1  ;;  %v278_v59 = vld [vmem:[%s1011_s15 + $0x30] sm:$0xff] }
  0xa4   : > { %718 = vst [vmem:[%s1035_s18 + $0x50] sm:$0xff] %v686_v62  ;;  %v670_v6 = vadd.f32 %v638_v60, %v533_v2  ;;  %v286_v60 = vld [vmem:[%s1011_s15 + $0x70] sm:$0xff] }
  0xa5   : > { %v694_v11 = vmax.f32 %v662_v5, 0.0  ;;  %v633_v5 = vadd.f32 %v1018_v57, %v598_v56 }
  0xa6   : > { %v702_v12 = vmax.f32 %v670_v6, 0.0  ;;  %v464_v13 = vpop.f32.mrf.mxu0  ;;  %v641_v6 = vadd.f32 %v1018_v57, %v606_v58 }
  0xa7   : > { %v488_v14 = vpop.f32.mrf.mxu1  ;;  %v647_v15 = vadd.f32 %v615_v3, %v464_v13  ;;  %726 = vst [vmem:[%s1035_s18 + $0x90] sm:$0xff] %v694_v11  ;;  %v583_v3 = vmul.f32 %v1013_v53, %v278_v59 }
  0xa8   : > { %v655_v16 = vadd.f32 %v623_v4, %v488_v14  ;;  %734 = vst [vmem:[%s1035_s18 + $0xd0] sm:$0xff] %v702_v12  ;;  %v591_v4 = vmul.f32 %v1013_v53, %v286_v60 }
  0xa9   : > { %v679_v21 = vmax.f32 %v647_v15, 0.0  ;;  %v618_v13 = vadd.f32 %v1018_v57, %v583_v3 }
  0xaa   : > { %v687_v22 = vmax.f32 %v655_v16, 0.0  ;;  %v512_v25 = vpop.f32.mrf.mxu2  ;;  %v626_v14 = vadd.f32 %v1018_v57, %v591_v4 }
  0xab   : > { %711 = vst [vmem:[%s1035_s18 + $0x18] sm:$0xff] %v679_v21  ;;  %v536_v26 = vpop.f32.mrf.mxu3  ;;  %v663_v29 = vadd.f32 %v631_v19, %v512_v25  ;;  %v279_v19 = vld [vmem:[%s1011_s15 + $0x38] sm:$0xff] }
  0xac   : > { %719 = vst [vmem:[%s1035_s18 + $0x58] sm:$0xff] %v687_v22  ;;  %v671_v30 = vadd.f32 %v639_v20, %v536_v26  ;;  %v287_v20 = vld [vmem:[%s1011_s15 + $0x78] sm:$0xff] }
  0xad   : > { %v695_v35 = vmax.f32 %v663_v29, 0.0  ;;  %v634_v29 = vadd.f32 %v1018_v57, %v599_v17 }
  0xae   : > { %v703_v36 = vmax.f32 %v671_v30, 0.0  ;;  %v467_v37 = vpop.f32.mrf.mxu0  ;;  %v642_v30 = vadd.f32 %v1018_v57, %v607_v18 }
  0xaf   : > { %v491_v38 = vpop.f32.mrf.mxu1  ;;  %v648_v39 = vadd.f32 %v616_v27, %v467_v37  ;;  %727 = vst [vmem:[%s1035_s18 + $0x98] sm:$0xff] %v695_v35  ;;  %v584_v27 = vmul.f32 %v1013_v53, %v279_v19 }
  0xb0   : > { %v656_v40 = vadd.f32 %v624_v28, %v491_v38  ;;  %735 = vst [vmem:[%s1035_s18 + $0xd8] sm:$0xff] %v703_v36  ;;  %v592_v28 = vmul.f32 %v1013_v53, %v287_v20 }
  0xb1   : > { %v680_v45 = vmax.f32 %v648_v39, 0.0  ;;  %v619_v37 = vadd.f32 %v1018_v57, %v584_v27 }
  0xb2   : > { %v688_v46 = vmax.f32 %v656_v40, 0.0  ;;  %v515_v49 = vpop.f32.mrf.mxu2  ;;  %v627_v38 = vadd.f32 %v1018_v57, %v592_v28 }
  0xb3   : > { %712 = vst [vmem:[%s1035_s18 + $0x20] sm:$0xff] %v680_v45  ;;  %v539_v50 = vpop.f32.mrf.mxu3  ;;  %v664_v54 = vadd.f32 %v632_v43, %v515_v49  ;;  %v635_v49 = vadd.f32 %v1018_v57, %v600_v41 }
  0xb4   : > { %720 = vst [vmem:[%s1035_s18 + $0x60] sm:$0xff] %v688_v46  ;;  %v672_v55 = vadd.f32 %v640_v44, %v539_v50  ;;  %v643_v50 = vadd.f32 %v1018_v57, %v608_v42 }
  0xb5   : > { %v696_v61 = vmax.f32 %v664_v54, 0.0 }
  0xb6   : > { %v704_v62 = vmax.f32 %v672_v55, 0.0  ;;  %v470_v63 = vpop.f32.mrf.mxu0 }
  0xb7   : > { %v494_v0 = vpop.f32.mrf.mxu1  ;;  %v649_v1 = vadd.f32 %v617_v51, %v470_v63  ;;  %728 = vst [vmem:[%s1035_s18 + $0xa0] sm:$0xff] %v696_v61 }
  0xb8   : > { %v657_v2 = vadd.f32 %v625_v52, %v494_v0  ;;  %736 = vst [vmem:[%s1035_s18 + $0xe0] sm:$0xff] %v704_v62 }
  0xb9   : > { %v681_v7 = vmax.f32 %v649_v1, 0.0 }
  0xba   : > { %v689_v8 = vmax.f32 %v657_v2, 0.0  ;;  %v518_v11 = vpop.f32.mrf.mxu2 }
  0xbb   : > { %713 = vst [vmem:[%s1035_s18 + $0x28] sm:$0xff] %v681_v7  ;;  %v542_v12 = vpop.f32.mrf.mxu3  ;;  %v665_v15 = vadd.f32 %v633_v5, %v518_v11 }
  0xbc   : > { %721 = vst [vmem:[%s1035_s18 + $0x68] sm:$0xff] %v689_v8  ;;  %v673_v16 = vadd.f32 %v641_v6, %v542_v12 }
  0xbd   : > { %v697_v21 = vmax.f32 %v665_v15, 0.0 }
  0xbe   : > { %v705_v22 = vmax.f32 %v673_v16, 0.0  ;;  %v473_v23 = vpop.f32.mrf.mxu0 }
  0xbf   : > { %v497_v24 = vpop.f32.mrf.mxu1  ;;  %v650_v25 = vadd.f32 %v618_v13, %v473_v23  ;;  %729 = vst [vmem:[%s1035_s18 + $0xa8] sm:$0xff] %v697_v21 }
  0xc0   : > { %v658_v26 = vadd.f32 %v626_v14, %v497_v24  ;;  %737 = vst [vmem:[%s1035_s18 + $0xe8] sm:$0xff] %v705_v22 }
  0xc1   : > { %v682_v31 = vmax.f32 %v650_v25, 0.0 }
  0xc2   : > { %v690_v32 = vmax.f32 %v658_v26, 0.0  ;;  %v521_v35 = vpop.f32.mrf.mxu2 }
  0xc3   : > { %714 = vst [vmem:[%s1035_s18 + $0x30] sm:$0xff] %v682_v31  ;;  %v545_v36 = vpop.f32.mrf.mxu3  ;;  %v666_v39 = vadd.f32 %v634_v29, %v521_v35 }
  0xc4   : > { %722 = vst [vmem:[%s1035_s18 + $0x70] sm:$0xff] %v690_v32  ;;  %v674_v40 = vadd.f32 %v642_v30, %v545_v36 }
  0xc5   : > { %v698_v43 = vmax.f32 %v666_v39, 0.0 }
  0xc6   : > { %v706_v44 = vmax.f32 %v674_v40, 0.0  ;;  %v476_v45 = vpop.f32.mrf.mxu0 }
  0xc7   : > { %v500_v46 = vpop.f32.mrf.mxu1  ;;  %v651_v47 = vadd.f32 %v619_v37, %v476_v45  ;;  %730 = vst [vmem:[%s1035_s18 + $0xb0] sm:$0xff] %v698_v43 }
  0xc8   : > { %v659_v48 = vadd.f32 %v627_v38, %v500_v46  ;;  %738 = vst [vmem:[%s1035_s18 + $0xf0] sm:$0xff] %v706_v44 }
  0xc9   : > { %v683_v51 = vmax.f32 %v651_v47, 0.0 }
  0xca   : > { %v691_v52 = vmax.f32 %v659_v48, 0.0  ;;  %v524_v54 = vpop.f32.mrf.mxu2 }
  0xcb   : > { %715 = vst [vmem:[%s1035_s18 + $0x38] sm:$0xff] %v683_v51  ;;  %v548_v53 = vpop.f32.mrf.mxu3  ;;  %v667_v55 = vadd.f32 %v635_v49, %v524_v54 }
  0xcc   : > { %723 = vst [vmem:[%s1035_s18 + $0x78] sm:$0xff] %v691_v52  ;;  %v675_v56 = vadd.f32 %v643_v50, %v548_v53 }
  0xcd   : > { %v699_v58 = vmax.f32 %v667_v55, 0.0 }
  0xce   : > { %v707_v59 = vmax.f32 %v675_v56, 0.0 }
  0xcf   : > { %731 = vst [vmem:[%s1035_s18 + $0xb8] sm:$0xff] %v699_v58 }
  0xd0   : > { %739 = vst [vmem:[%s1035_s18 + $0xf8] sm:$0xff] %v707_v59 }
  0xd1 PF: > { %s16_s21 = sadd.s32 1, %s875_s21  }
  0xd2   : > { %p13_p4 = scmp.ge.s32.totalorder %s16_s21, 4  }
  0xd4   :  { %15 = sbr.rel (!%p13_p4) target bundleno = 1 (0x1), region = 77 }

// kernel: residual_dsc_block.2
= control target key start
LH: loop header
LB: loop body
LE: loop exit
PB: predicated region body
PF: predicated region fallthrough
CT: control target
= control target key end

     0   :  { %s1680_s15 = smov 0   ;;  %s2665_s0 = inlined_call_operand.vmem [shape: f32[2,16,16,4], index: 0, kind: input, shape index: {}]   ;;  %s2666_s1 = inlined_call_operand.vmem [shape: f32[9,4], index: 1, kind: input, shape index: {}]   ;;  %s2667_s2 = inlined_call_operand.vmem [shape: f32[4,128], index: 2, kind: input, shape index: {}]   ;;  %s2668_s3 = inlined_call_operand.vmem [shape: f32[2,256,128], index: 3, kind: output, shape index: {0}]   ;;  %s2669_s4 = inlined_call_operand.vmem [shape: f32[2,128], index: 4, kind: output, shape index: {1}]  }
   0x1 LB: > { %s1585_s16 = sadd.s32 4294967295, %s1652_s15   ;;  %p1589_p0 = scmp.ge.s32.totalorder %s1652_s15, 1  ;;  %s1652_s15 = sphi %s1680_s15, %s15_s15  }
   0x2   : > { %p160_p1 = scmp.lt.s32.totalorder %s1652_s15, 3 }
   0x4   : > { %p161_p2 = pnand %p1589_p0, %p160_p1 }
   0x6   : > { %164 = sbr.rel (%p161_p2) target bundleno = 394 (0x18a), region = 32 }
   0xb   : > { %p186_p3 = scmp.lt.s32.totalorder %s1585_s16, 1  ;;  %p1594_p4 = scmp.ne.s32.totalorder %s1585_s16, 0 }
   0xd   : > { %s187_s17 = scalar_select %p186_p3, %s1585_s16, 1 }
   0xe   : > { %199 = sbr.rel (%p1594_p4) target bundleno = 75 (0x4b), region = 36 }
   0xf   : > { %s1630_s18 = sshll.u32 %s187_s17, 8 }
  0x10   : > { %s1691_s21 = scalar_lea.vmem %s2665_s0, %s1630_s18  ;;  %s1696_s24 = scalar_lea.vmem %s2668_s3, %s1630_s18 }
  0x13   : > { %vm201_vm0 = vcmask 31744   ;;  %v1654_v0 = vmov 0.0   ;;  %vm204_vm1 = vcmask 25600  }
  0x14   : > { %200 = vst [vmem:[%s2669_s4] sm:$0x3] %v1654_v0 }
  0x15   : > { %202 = vst.msk [vmem:[#allocation2] sm:$0xff] %vm201_vm0, %v1654_v0 }
  0x16   : > { %203 = vst.msk [vmem:[#allocation2 + $0x8] sm:$0xff] %vm201_vm0, %v1654_v0 }
  0x17   : > { %206 = vst.msk [vmem:[#allocation2 + $0x18] sm:$0xff] %vm201_vm0, %v1654_v0 }
  0x18   : > { %207 = vst.msk [vmem:[#allocation2 + $0x20] sm:$0xff] %vm201_vm0, %v1654_v0 }
  0x19   : > { %209 = vst.msk [vmem:[#allocation2 + $0x30] sm:$0xff] %vm201_vm0, %v1654_v0 }
  0x1a   : > { %210 = vst.msk [vmem:[#allocation2 + $0x38] sm:$0xff] %vm201_vm0, %v1654_v0 }
  0x1b   : > { %212 = vst.msk [vmem:[#allocation2 + $0x48] sm:$0xff] %vm201_vm0, %v1654_v0 }
  0x1c   : > { %213 = vst.msk [vmem:[#allocation2 + $0x50] sm:$0xff] %vm201_vm0, %v1654_v0 }
  0x1d   : > { %215 = vst.msk [vmem:[#allocation2 + $0x60] sm:$0xff] %vm201_vm0, %v1654_v0 }
  0x1e   : > { %216 = vst.msk [vmem:[#allocation2 + $0x68] sm:$0xff] %vm201_vm0, %v1654_v0 }
  0x1f   : > { %218 = vst.msk [vmem:[#allocation2 + $0x78] sm:$0xff] %vm201_vm0, %v1654_v0 }
  0x20   : > { %219 = vst.msk [vmem:[#allocation2 + $0x80] sm:$0xff] %vm201_vm0, %v1654_v0 }
  0x21   : > { %221 = vst.msk [vmem:[#allocation2 + $0x90] sm:$0xff] %vm201_vm0, %v1654_v0 }
  0x22   : > { %222 = vst.msk [vmem:[#allocation2 + $0x98] sm:$0xff] %vm201_vm0, %v1654_v0 }
  0x23   : > { %224 = vst.msk [vmem:[#allocation2 + $0xa8] sm:$0xff] %vm201_vm0, %v1654_v0 }
  0x24   : > { %225 = vst.msk [vmem:[#allocation2 + $0xb0] sm:$0xff] %vm201_vm0, %v1654_v0 }
  0x25   : > { %227 = vst.msk [vmem:[#allocation2 + $0xc0] sm:$0xff] %vm201_vm0, %v1654_v0 }
  0x26   : > { %228 = vst.msk [vmem:[#allocation2 + $0xc8] sm:$0xff] %vm201_vm0, %v1654_v0 }
  0x27   : > { %230 = vst.msk [vmem:[#allocation2 + $0xd8] sm:$0xff] %vm201_vm0, %v1654_v0 }
  0x28   : > { %231 = vst.msk [vmem:[#allocation2 + $0xe0] sm:$0xff] %vm201_vm0, %v1654_v0 }
  0x29   : > { %233 = vst.msk [vmem:[#allocation2 + $0xf0] sm:$0xff] %vm201_vm0, %v1654_v0 }
  0x2a   : > { %234 = vst.msk [vmem:[#allocation2 + $0xf8] sm:$0xff] %vm201_vm0, %v1654_v0 }
  0x2b   : > { %236 = vst.msk [vmem:[#allocation2 + $0x108] sm:$0xff] %vm201_vm0, %v1654_v0 }
  0x2c   : > { %237 = vst.msk [vmem:[#allocation2 + $0x110] sm:$0xff] %vm201_vm0, %v1654_v0 }
  0x2d   : > { %239 = vst.msk [vmem:[#allocation2 + $0x120] sm:$0xff] %vm201_vm0, %v1654_v0 }
  0x2e   : > { %240 = vst.msk [vmem:[#allocation2 + $0x128] sm:$0xff] %vm201_vm0, %v1654_v0 }
  0x2f   : > { %242 = vst.msk [vmem:[#allocation2 + $0x138] sm:$0xff] %vm201_vm0, %v1654_v0 }
  0x30   : > { %243 = vst.msk [vmem:[#allocation2 + $0x140] sm:$0xff] %vm201_vm0, %v1654_v0 }
  0x31   : > { %245 = vst.msk [vmem:[#allocation2 + $0x150] sm:$0xff] %vm201_vm0, %v1654_v0 }
  0x32   : > { %246 = vst.msk [vmem:[#allocation2 + $0x158] sm:$0xff] %vm201_vm0, %v1654_v0 }
  0x33   : > { %248 = vst.msk [vmem:[#allocation2 + $0x168] sm:$0xff] %vm201_vm0, %v1654_v0 }
  0x34   : > { %249 = vst.msk [vmem:[#allocation2 + $0x170] sm:$0xff] %vm201_vm0, %v1654_v0 }
  0x35   : > { %251 = vst.msk [vmem:[#allocation2 + $0x180] sm:$0xff] %vm201_vm0, %v1654_v0 }
  0x36   : > { %252 = vst.msk [vmem:[#allocation2 + $0x188] sm:$0xff] %vm201_vm0, %v1654_v0 }
  0x37   : > { %254 = vst.msk [vmem:[#allocation2 + $0x198] sm:$0xff] %vm201_vm0, %v1654_v0 }
  0x38   : > { %255 = vst.msk [vmem:[#allocation2 + $0x1a0] sm:$0xff] %vm201_vm0, %v1654_v0 }
  0x39   : > { %205 = vst.msk [vmem:[#allocation2 + $0x10] sm:$0x3] %vm204_vm1, %v1654_v0 }
  0x3a   : > { %208 = vst.msk [vmem:[#allocation2 + $0x28] sm:$0x3] %vm204_vm1, %v1654_v0 }
  0x3b   : > { %211 = vst.msk [vmem:[#allocation2 + $0x40] sm:$0x3] %vm204_vm1, %v1654_v0 }
  0x3c   : > { %214 = vst.msk [vmem:[#allocation2 + $0x58] sm:$0x3] %vm204_vm1, %v1654_v0 }
  0x3d   : > { %217 = vst.msk [vmem:[#allocation2 + $0x70] sm:$0x3] %vm204_vm1, %v1654_v0 }
  0x3e   : > { %220 = vst.msk [vmem:[#allocation2 + $0x88] sm:$0x3] %vm204_vm1, %v1654_v0 }
  0x3f   : > { %223 = vst.msk [vmem:[#allocation2 + $0xa0] sm:$0x3] %vm204_vm1, %v1654_v0 }
  0x40   : > { %226 = vst.msk [vmem:[#allocation2 + $0xb8] sm:$0x3] %vm204_vm1, %v1654_v0 }
  0x41   : > { %229 = vst.msk [vmem:[#allocation2 + $0xd0] sm:$0x3] %vm204_vm1, %v1654_v0 }
  0x42   : > { %232 = vst.msk [vmem:[#allocation2 + $0xe8] sm:$0x3] %vm204_vm1, %v1654_v0 }
  0x43   : > { %235 = vst.msk [vmem:[#allocation2 + $0x100] sm:$0x3] %vm204_vm1, %v1654_v0 }
  0x44   : > { %238 = vst.msk [vmem:[#allocation2 + $0x118] sm:$0x3] %vm204_vm1, %v1654_v0 }
  0x45   : > { %241 = vst.msk [vmem:[#allocation2 + $0x130] sm:$0x3] %vm204_vm1, %v1654_v0 }
  0x46   : > { %244 = vst.msk [vmem:[#allocation2 + $0x148] sm:$0x3] %vm204_vm1, %v1654_v0 }
  0x47   : > { %247 = vst.msk [vmem:[#allocation2 + $0x160] sm:$0x3] %vm204_vm1, %v1654_v0 }
  0x48   : > { %250 = vst.msk [vmem:[#allocation2 + $0x178] sm:$0x3] %vm204_vm1, %v1654_v0 }
  0x49   : > { %253 = vst.msk [vmem:[#allocation2 + $0x190] sm:$0x3] %vm204_vm1, %v1654_v0 }
  0x4a   : > { %256 = vst.msk [vmem:[#allocation2 + $0x1a8] sm:$0x3] %vm204_vm1, %v1654_v0 }
  0x4b PF: > { %v1167_v1 = vld [vmem:[%s2667_s2] sm:$0xf]  ;;  %vm1264_vm2 = vcmask 1043456   ;;  %v258_v3 = vld [vmem:[%s1691_s21 + $0x8] sm:$0xff]  ;;  %vm290_vm3 = vcmask 31744   ;;  %v259_v4 = vld [vmem:[%s1691_s21 + $0x10] sm:$0xff] }
  0x4c   : > { %v257_v2 = vld [vmem:[%s1691_s21] sm:$0xff]  ;;  %1595 = vmatpush.msk.msra.mxu0 %vm1264_vm2, %v1167_v1  ;;  %v260_v5 = vld [vmem:[%s1691_s21 + $0x18] sm:$0xff]  ;;  %1632 = vmatpush.msk.msra.mxu1 %vm1264_vm2, %v1167_v1  ;;  %292 = vst.msk [vmem:[#allocation2 + $0x21] sm:$0xff] %vm290_vm3, %v258_v3  ;;  %v326_v18 = vld [vmem:[#allocation2 + $0x8] sm:$0xff]  ;;  %vm1520_vm4 = vcmask 1040384  }
  0x4d   : > { %291 = vst.msk [vmem:[#allocation2 + $0x19] sm:$0xff] %vm290_vm3, %v257_v2  ;;  %v323_v6 = vld [vmem:[%s2666_s1] sm:$0xff]  ;;  %1633 = vmatpush.msk.msra.mxu2 %vm1264_vm2, %v1167_v1  ;;  %1634 = vmatpush.msk.msra.mxu3 %vm1264_vm2, %v1167_v1  ;;  %v391_v19 = vld [vmem:[#allocation2 + $0x9] sm:$0xff]  ;;  %v264_v29 = vld [vmem:[%s1691_s21 + $0x38] sm:$0xff] }
  0x4e   : > { %v325_v7 = vld [vmem:[#allocation2] sm:$0xff]  ;;  %v1767_v8 = vperm.slane %v323_v6, 0  ;;  %293 = vst.msk [vmem:[#allocation2 + $0x31] sm:$0xff] %vm290_vm3, %v259_v4  ;;  %v1770_v10 = vperm.slane %v323_v6, 1  ;;  %v1772_v12 = vperm.slane %v323_v6, 2  ;;  %v1778_v16 = vperm.slane %v323_v6, 3 }
  0x4f   : > { %v390_v9 = vld [vmem:[#allocation2 + $0x1] sm:$0xff]  ;;  %294 = vst.msk [vmem:[#allocation2 + $0x39] sm:$0xff] %vm290_vm3, %v260_v5  ;;  %v1780_v17 = vperm.slane %v323_v6, 4  ;;  %v488_v20 = vld [vmem:[#allocation2 + $0xa] sm:$0xff]  ;;  %v1788_v28 = vperm.slane %v323_v6, 5  ;;  %v1794_v34 = vperm.slane %v323_v6, 6 }
  0x50   : > { %v487_v11 = vld [vmem:[#allocation2 + $0x2] sm:$0xff]  ;;  %v358_v13 = vmul.f32 %v1767_v8, %v325_v7  ;;  %v423_v14 = vmul.f32 %v1770_v10, %v390_v9  ;;  %v359_v21 = vmul.f32 %v1767_v8, %v326_v18  ;;  %v424_v22 = vmul.f32 %v1770_v10, %v391_v19  ;;  %v263_v26 = vld [vmem:[%s1691_s21 + $0x30] sm:$0xff]  ;;  %298 = vst.msk [vmem:[#allocation2 + $0x69] sm:$0xff] %vm290_vm3, %v264_v29  ;;  %v268_v60 = vld [vmem:[%s1691_s21 + $0x58] sm:$0xff] }
  0x51   : > { %v520_v15 = vmul.f32 %v1772_v12, %v487_v11  ;;  %v521_v23 = vmul.f32 %v1772_v12, %v488_v20  ;;  %v261_v24 = vld [vmem:[%s1691_s21 + $0x20] sm:$0xff]  ;;  %v262_v25 = vld [vmem:[%s1691_s21 + $0x28] sm:$0xff]  ;;  %v267_v37 = vld [vmem:[%s1691_s21 + $0x50] sm:$0xff]  ;;  %v1805_v42 = vperm.slane %v323_v6, 7  ;;  %297 = vst.msk [vmem:[#allocation2 + $0x61] sm:$0xff] %vm290_vm3, %v263_v26 }
  0x52   : > { %v455_v27 = vadd.f32 %v423_v14, %v358_v13  ;;  %295 = vst.msk [vmem:[#allocation2 + $0x49] sm:$0xff] %vm290_vm3, %v261_v24  ;;  %v265_v30 = vld [vmem:[%s1691_s21 + $0x40] sm:$0xff]  ;;  %v266_v31 = vld [vmem:[%s1691_s21 + $0x48] sm:$0xff]  ;;  %v456_v36 = vadd.f32 %v424_v22, %v359_v21  ;;  %v271_v61 = vld [vmem:[%s1691_s21 + $0x70] sm:$0xff] }
  0x53   : > { %v1799_v35 = vld [vmem:[%s2666_s1 + $0x8] ss:$0 sm:$0xff]  ;;  %296 = vst.msk [vmem:[#allocation2 + $0x51] sm:$0xff] %vm290_vm3, %v262_v25  ;;  %v272_v2 = vld [vmem:[%s1691_s21 + $0x78] sm:$0xff]  ;;  %v273_v7 = vld [vmem:[%s1691_s21 + $0x80] sm:$0xff] }
  0x54   : > { %v584_v32 = vld [vmem:[#allocation2 + $0x18] sm:$0xff]  ;;  %v552_v38 = vadd.f32 %v520_v15, %v455_v27  ;;  %v585_v43 = vld [vmem:[#allocation2 + $0x20] sm:$0xff]  ;;  %v553_v47 = vadd.f32 %v521_v23, %v456_v36  ;;  %299 = vst.msk [vmem:[#allocation2 + $0x79] sm:$0xff] %vm290_vm3, %v265_v30  ;;  %v274_v15 = vld [vmem:[%s1691_s21 + $0x88] sm:$0xff] }
  0x55   : > { %v681_v33 = vld [vmem:[#allocation2 + $0x19] sm:$0xff]  ;;  %v617_v39 = vmul.f32 %v1778_v16, %v584_v32  ;;  %v682_v44 = vld [vmem:[#allocation2 + $0x21] sm:$0xff]  ;;  %v1808_v45 = vld [vmem:[#allocation2 + $0x30] sm:$0xff]  ;;  %v618_v48 = vmul.f32 %v1778_v16, %v585_v43  ;;  %v360_v56 = vmul.f32 %v584_v32, %v1767_v8  ;;  %300 = vst.msk [vmem:[#allocation2 + $0x81] sm:$0xff] %vm290_vm3, %v266_v31  ;;  %v361_v22 = vmul.f32 %v585_v43, %v1767_v8 }
  0x56   : > { %v714_v40 = vmul.f32 %v1780_v17, %v681_v33  ;;  %v778_v41 = vld [vmem:[#allocation2 + $0x1a] sm:$0xff]  ;;  %v1810_v46 = vld [vmem:[#allocation2 + $0x31] sm:$0xff]  ;;  %v715_v49 = vmul.f32 %v1780_v17, %v682_v44  ;;  %v779_v50 = vld [vmem:[#allocation2 + $0x22] sm:$0xff]  ;;  %v909_v57 = vmul.f32 %v1794_v34, %v1808_v45  ;;  %v425_v0 = vmul.f32 %v681_v33, %v1770_v10  ;;  %301 = vst.msk [vmem:[#allocation2 + $0x91] sm:$0xff] %vm290_vm3, %v267_v37 }
  0x57   : > { %v649_v51 = vadd.f32 %v617_v39, %v552_v38  ;;  %v811_v52 = vmul.f32 %v1788_v28, %v778_v41  ;;  %v1816_v53 = vld [vmem:[#allocation2 + $0x32] sm:$0xff]  ;;  %v650_v58 = vadd.f32 %v618_v48, %v553_v47  ;;  %v812_v59 = vmul.f32 %v1788_v28, %v779_v50  ;;  %302 = vst.msk [vmem:[#allocation2 + $0x99] sm:$0xff] %vm290_vm3, %v268_v60 }
  0x58   : > { %v1818_v54 = vld [vmem:[#allocation2 + $0x38] sm:$0xff]  ;;  %v1006_v63 = vmul.f32 %v1805_v42, %v1810_v46  ;;  %v522_v1 = vmul.f32 %v778_v41, %v1772_v12  ;;  %v1103_v3 = vmul.f32 %v1799_v35, %v1816_v53  ;;  %v457_v11 = vadd.f32 %v425_v0, %v360_v56  ;;  %305 = vst.msk [vmem:[#allocation2 + $0xc1] sm:$0xff] %vm290_vm3, %v271_v61  ;;  %v1852_v20 = vld [vmem:[#allocation2 + $0x60] sm:$0xff]  ;;  %v275_v24 = vld [vmem:[%s1691_s21 + $0x90] sm:$0xff] }
  0x59   : > { %v1820_v55 = vld [vmem:[#allocation2 + $0x39] sm:$0xff]  ;;  %v746_v62 = vadd.f32 %v714_v40, %v649_v51  ;;  %v747_v4 = vadd.f32 %v715_v49, %v650_v58  ;;  %v910_v5 = vmul.f32 %v1794_v34, %v1818_v54  ;;  %v619_v13 = vmul.f32 %v1808_v45, %v1778_v16  ;;  %v1854_v21 = vld [vmem:[#allocation2 + $0x61] sm:$0xff]  ;;  %306 = vst.msk [vmem:[#allocation2 + $0xc9] sm:$0xff] %vm290_vm3, %v272_v2  ;;  %v1902_v2 = vld [vmem:[#allocation2 + $0x69] sm:$0xff] }
  0x5a   : > { %v1007_v6 = vmul.f32 %v1805_v42, %v1820_v55  ;;  %v716_v14 = vmul.f32 %v1810_v46, %v1780_v17  ;;  %v813_v19 = vmul.f32 %v1816_v53, %v1788_v28  ;;  %v426_v23 = vmul.f32 %v682_v44, %v1770_v10  ;;  %v1860_v27 = vld [vmem:[#allocation2 + $0x48] sm:$0xff]  ;;  %307 = vst.msk [vmem:[#allocation2 + $0xd9] sm:$0xff] %vm290_vm3, %v273_v7  ;;  %v1877_v41 = vld [vmem:[#allocation2 + $0x3a] sm:$0xff] }
  0x5b   : > { %v843_v9 = vadd.f32 %v811_v52, %v746_v62  ;;  %v844_v18 = vadd.f32 %v812_v59, %v747_v4  ;;  %v554_v26 = vadd.f32 %v522_v1, %v457_v11  ;;  %v366_v29 = vmul.f32 %v1767_v8, %v1852_v20  ;;  %v1866_v31 = vld [vmem:[#allocation2 + $0x62] sm:$0xff]  ;;  %v1871_v36 = vld [vmem:[#allocation2 + $0x78] sm:$0xff]  ;;  %308 = vst.msk [vmem:[#allocation2 + $0xe1] sm:$0xff] %vm290_vm3, %v274_v15  ;;  %v1912_v11 = vld [vmem:[#allocation2 + $0x6a] sm:$0xff] }
  0x5c   : > { %v431_v30 = vmul.f32 %v1770_v10, %v1854_v21  ;;  %v528_v33 = vmul.f32 %v1772_v12, %v1866_v31  ;;  %v1873_v37 = vld [vmem:[#allocation2 + $0x79] sm:$0xff]  ;;  %v458_v38 = vadd.f32 %v426_v23, %v361_v22  ;;  %v523_v39 = vmul.f32 %v779_v50, %v1772_v12  ;;  %v1879_v44 = vld [vmem:[#allocation2 + $0x49] sm:$0xff]  ;;  %309 = vst.msk [vmem:[#allocation2 + $0xf1] sm:$0xff] %vm290_vm3, %v275_v24 }
  0x5d   : > { %v941_v25 = vadd.f32 %v909_v57, %v843_v9  ;;  %v942_v32 = vadd.f32 %v910_v5, %v844_v18  ;;  %v651_v43 = vadd.f32 %v619_v13, %v554_v26  ;;  %v625_v48 = vmul.f32 %v1778_v16, %v1871_v36  ;;  %v1886_v51 = vld [vmem:[#allocation2 + $0x7a] sm:$0xff]  ;;  %v1888_v57 = vld [vmem:[#allocation2 + $0x4a] sm:$0xff]  ;;  %2731 = vst [vmem:[#allocation4_spill] sm:$0xff] %v1902_v2 }
  0x5e   : > { %v463_v47 = vadd.f32 %v431_v30, %v366_v29  ;;  %v911_v49 = vmul.f32 %v1794_v34, %v1860_v27  ;;  %v555_v50 = vadd.f32 %v523_v39, %v458_v38  ;;  %v722_v59 = vmul.f32 %v1780_v17, %v1873_v37  ;;  %v1892_v60 = vld [vmem:[#allocation2 + $0x90] sm:$0xff]  ;;  %v1900_v1 = vld [vmem:[#allocation2 + $0x68] sm:$0xff]  ;;  %2732 = vst [vmem:[#allocation5_spill] sm:$0xff] %v1912_v11  ;;  %v269_v13 = vld [vmem:[%s1691_s21 + $0x60] sm:$0xff] }
  0x5f   : > { %v1038_v40 = vadd.f32 %v1006_v63, %v941_v25  ;;  %v748_v56 = vadd.f32 %v716_v14, %v651_v43  ;;  %v1039_v61 = vadd.f32 %v1007_v6, %v942_v32  ;;  %v1104_v62 = vmul.f32 %v1799_v35, %v1877_v41  ;;  %2730 = vst [vmem:[#allocation3_spill] sm:$0xff] %v1900_v1  ;;  %v1908_v7 = vld [vmem:[#allocation2 + $0x91] sm:$0xff]  ;;  %v1925_v23 = vld [vmem:[#allocation2 + $0x80] sm:$0xff]  ;;  %v270_v24 = vld [vmem:[%s1691_s21 + $0x68] sm:$0xff] }
  0x60   : > { %v560_v58 = vadd.f32 %v528_v33, %v463_v47  ;;  %v1008_v63 = vmul.f32 %v1805_v42, %v1879_v44  ;;  %v620_v0 = vmul.f32 %v1818_v54, %v1778_v16  ;;  %v819_v6 = vmul.f32 %v1788_v28, %v1886_v51  ;;  %v1923_v22 = vld [vmem:[#allocation2 + $0x50] sm:$0xff]  ;;  %2733 = vst [vmem:[#allocation6_spill] sm:$0xff] %v1925_v23  ;;  %v1937_v38 = vld [vmem:[#allocation2 + $0x81] sm:$0xff] }
  0x61   : > { %v1135_v52 = vadd.f32 %v1103_v3, %v1038_v40  ;;  %v276_v3 = vld [vmem:[%s1691_s21 + $0x98] sm:$0xff]  ;;  %v845_v4 = vadd.f32 %v813_v19, %v748_v56  ;;  %v717_v9 = vmul.f32 %v1820_v55, %v1780_v17  ;;  %v1917_v14 = vmul.f32 %v1799_v35, %v1888_v57  ;;  %2735 = vst [vmem:[#allocation8_spill] sm:$0xff] %v1937_v38 }
  0x62   : > { %v657_v5 = vadd.f32 %v625_v48, %v560_v58  ;;  %v917_v15 = vmul.f32 %v1794_v34, %v1892_v60  ;;  %v652_v18 = vadd.f32 %v620_v0, %v555_v50  ;;  %v814_v19 = vmul.f32 %v1877_v41, %v1788_v28  ;;  %310 = vst.msk [vmem:[#allocation2 + $0xf9] sm:$0xff] %vm290_vm3, %v276_v3  ;;  %v1929_v29 = vld [vmem:[#allocation2 + $0x92] sm:$0xff]  ;;  %v1948_v50 = vld [vmem:[#allocation2 + $0xc0] sm:$0xff] }
  0x63   : > { %1596 = vmatmul.msk.f32.vlgmr.msra.gmra.mxu0 %vm290_vm3, %v1135_v52  ;;  %v943_v25 = vadd.f32 %v911_v49, %v845_v4  ;;  %v1931_v30 = vld [vmem:[#allocation2 + $0x51] sm:$0xff]  ;;  %v367_v32 = vmul.f32 %v1767_v8, %v1900_v1  ;;  %v432_v33 = vmul.f32 %v1770_v10, %v1902_v2  ;;  %303 = vst.msk [vmem:[#allocation2 + $0xa9] sm:$0xff] %vm290_vm3, %v269_v13  ;;  %v1946_v49 = vld [vmem:[#allocation2 + $0x82] sm:$0xff] }
  0x64   : > { %v754_v26 = vadd.f32 %v722_v59, %v657_v5  ;;  %2734 = vst [vmem:[#allocation7_spill] sm:$0xff] %v1931_v30  ;;  %v1136_v39 = vadd.f32 %v1104_v62, %v1039_v61  ;;  %v1014_v40 = vmul.f32 %v1805_v42, %v1908_v7  ;;  %v749_v43 = vadd.f32 %v717_v9, %v652_v18  ;;  %v1942_v47 = vld [vmem:[#allocation2 + $0x52] sm:$0xff]  ;;  %v1957_v62 = vld [vmem:[#allocation2 + $0xc1] sm:$0xff] }
  0x65   : > { %2736 = vst [vmem:[#allocation9_spill] sm:$0xff] %v1942_v47  ;;  %v529_v48 = vmul.f32 %v1772_v12, %v1912_v11  ;;  %v912_v56 = vmul.f32 %v1794_v34, %v1923_v22  ;;  %v464_v58 = vadd.f32 %v432_v33, %v367_v32  ;;  %v626_v59 = vmul.f32 %v1778_v16, %v1925_v23  ;;  %v1955_v61 = vld [vmem:[#allocation2 + $0x98] sm:$0xff]  ;;  %v1959_v0 = vld [vmem:[#allocation2 + $0xc2] sm:$0xff] }
  0x66   : > { %2737 = vst [vmem:[#allocation10_spill] sm:$0xff] %v1946_v49  ;;  %v851_v52 = vadd.f32 %v819_v6, %v754_v26  ;;  %v1111_v3 = vmul.f32 %v1799_v35, %v1929_v29  ;;  %v846_v4 = vadd.f32 %v814_v19, %v749_v43  ;;  %v1009_v5 = vmul.f32 %v1805_v42, %v1931_v30  ;;  %v1967_v9 = vld [vmem:[#allocation2 + $0x99] sm:$0xff]  ;;  %v278_v18 = vld [vmem:[%s1691_s21 + $0xa8] sm:$0xff]  ;;  %v279_v43 = vld [vmem:[%s1691_s21 + $0xb0] sm:$0xff] }
  0x67   : > { %2738 = vst [vmem:[#allocation11_spill] sm:$0xff] %v1948_v50  ;;  %v723_v6 = vmul.f32 %v1780_v17, %v1937_v38  ;;  %v277_v13 = vld [vmem:[%s1691_s21 + $0xa0] sm:$0xff]  ;;  %v561_v32 = vadd.f32 %v529_v48, %v464_v58  ;;  %v374_v11 = vmul.f32 %v1767_v8, %v1948_v50  ;;  %v1975_v19 = vld [vmem:[#allocation2 + $0xd8] sm:$0xff]  ;;  %v1106_v2 = vmul.f32 %v1799_v35, %v1942_v47 }
  0x68   : > { %304 = vst.msk [vmem:[#allocation2 + $0xb1] sm:$0xff] %vm290_vm3, %v270_v24  ;;  %v1040_v24 = vadd.f32 %v1008_v63, %v943_v25  ;;  %v949_v26 = vadd.f32 %v917_v15, %v851_v52  ;;  %v1971_v33 = vld [vmem:[#allocation2 + $0x9a] sm:$0xff]  ;;  %v820_v1 = vmul.f32 %v1788_v28, %v1946_v49  ;;  %v439_v63 = vmul.f32 %v1770_v10, %v1957_v62 }
  0x69   : > { %2739 = vst [vmem:[#allocation12_spill] sm:$0xff] %v1957_v62  ;;  %v536_v15 = vmul.f32 %v1772_v12, %v1959_v0  ;;  %v280_v25 = vld [vmem:[%s1691_s21 + $0xb8] sm:$0xff]  ;;  %v944_v52 = vadd.f32 %v912_v56, %v846_v4  ;;  %v658_v58 = vadd.f32 %v626_v59, %v561_v32  ;;  %v281_v47 = vld [vmem:[%s1691_s21 + $0xc0] sm:$0xff]  ;;  %v1015_v62 = vmul.f32 %v1805_v42, %v1967_v9  ;;  %v2003_v56 = vld [vmem:[#allocation2 + $0xf0] sm:$0xff] }
  0x6a   : > { %2740 = vst [vmem:[#allocation13_spill] sm:$0xff] %v1959_v0  ;;  %v1046_v48 = vadd.f32 %v1014_v40, %v949_v26  ;;  %v1992_v50 = vld [vmem:[#allocation2 + $0xd9] sm:$0xff]  ;;  %v1112_v0 = vmul.f32 %v1799_v35, %v1971_v33  ;;  %v1137_v59 = vadd.f32 %v1917_v14, %v1040_v24  ;;  %v2007_v32 = vld [vmem:[#allocation2 + $0xf1] sm:$0xff]  ;;  %v427_v14 = vmul.f32 %v1810_v46, %v1770_v10 }
  0x6b   : > { %2741 = vst [vmem:[#allocation14_spill] sm:$0xff] %v1967_v9  ;;  %1597 = vmatmul.msk.f32.gmra.mxu0 %vm290_vm3, %v1136_v39  ;;  %v633_v39 = vmul.f32 %v1778_v16, %v1975_v19  ;;  %v2001_v40 = vld [vmem:[#allocation2 + $0xda] sm:$0xff]  ;;  %v755_v26 = vadd.f32 %v723_v6, %v658_v58  ;;  %v2015_v9 = vld [vmem:[#allocation2 + $0xf2] sm:$0xff]  ;;  %v1022_v46 = vmul.f32 %v1805_v42, %v2007_v32 }
  0x6c   : > { %2742 = vst [vmem:[#allocation15_spill] sm:$0xff] %v1971_v33  ;;  %v1143_v4 = vadd.f32 %v1111_v3, %v1046_v48  ;;  %v524_v3 = vmul.f32 %v1816_v53, %v1772_v12  ;;  %v283_v6 = vld [vmem:[%s1691_s21 + $0xd0] sm:$0xff]  ;;  %v621_v53 = vmul.f32 %v1860_v27, %v1778_v16 }
  0x6d   : > { %2743 = vst [vmem:[#allocation16_spill] sm:$0xff] %v1975_v19  ;;  %v730_v19 = vmul.f32 %v1780_v17, %v1992_v50  ;;  %v852_v24 = vadd.f32 %v820_v1, %v755_v26  ;;  %v1119_v1 = vmul.f32 %v1799_v35, %v2015_v9 }
  0x6e   : > { %311 = vst.msk [vmem:[#allocation2 + $0x109] sm:$0xff] %vm290_vm3, %v277_v13  ;;  %v918_v13 = vmul.f32 %v1794_v34, %v1955_v61  ;;  %1604 = vmatmul.msk.f32.vlgmr.msra.gmra.mxu1 %vm290_vm3, %v1143_v4  ;;  %v530_v4 = vmul.f32 %v1886_v51, %v1772_v12 }
  0x6f   : > { %312 = vst.msk [vmem:[#allocation2 + $0x111] sm:$0xff] %vm290_vm3, %v278_v18  ;;  %v471_v18 = vadd.f32 %v439_v63, %v374_v11  ;;  %v362_v11 = vmul.f32 %v1808_v45, %v1767_v8  ;;  %v282_v63 = vld [vmem:[%s1691_s21 + $0xc8] sm:$0xff]  ;;  %v1041_v45 = vadd.f32 %v1009_v5, %v944_v52  ;;  %v368_v5 = vmul.f32 %v1871_v36, %v1767_v8 }
  0x70   : > { %2744 = vst [vmem:[#allocation17_spill] sm:$0xff] %v1992_v50  ;;  %v433_v52 = vmul.f32 %v1873_v37, %v1770_v10 }
  0x71   : > { %2745 = vst [vmem:[#allocation18_spill] sm:$0xff] %v2001_v40  ;;  %v568_v33 = vadd.f32 %v536_v15, %v471_v18  ;;  %v925_v15 = vmul.f32 %v1794_v34, %v2003_v56  ;;  %v459_v58 = vadd.f32 %v427_v14, %v362_v11  ;;  %v1138_v26 = vadd.f32 %v1106_v2, %v1041_v45  ;;  %v2063_v45 = vld [vmem:[#allocation2 + $0xe0] sm:$0xff] }
  0x72   : > { %2746 = vst [vmem:[#allocation19_spill] sm:$0xff] %v2003_v56  ;;  %v627_v14 = vmul.f32 %v1892_v60, %v1778_v16  ;;  %v724_v2 = vmul.f32 %v1908_v7, %v1780_v17 }
  0x73   : > { %313 = vst.msk [vmem:[#allocation2 + $0x121] sm:$0xff] %vm290_vm3, %v279_v43  ;;  %v827_v43 = vmul.f32 %v1788_v28, %v2001_v40  ;;  %v665_v48 = vadd.f32 %v633_v39, %v568_v33  ;;  %v556_v18 = vadd.f32 %v524_v3, %v459_v58  ;;  %v718_v39 = vmul.f32 %v1879_v44, %v1780_v17  ;;  %v2053_v3 = vld [vmem:[#allocation2 + $0xca] sm:$0xff] }
  0x74   : > { %2747 = vst [vmem:[#allocation20_spill] sm:$0xff] %v2007_v32  ;;  %1598 = vmatmul.msk.f32.gmra.mxu0 %vm290_vm3, %v1137_v59 }
  0x75   : > { %314 = vst.msk [vmem:[#allocation2 + $0x129] sm:$0xff] %vm290_vm3, %v280_v25  ;;  %v284_v25 = vld [vmem:[%s1691_s21 + $0xd8] sm:$0xff]  ;;  %v762_v33 = vadd.f32 %v730_v19, %v665_v48  ;;  %v2051_v19 = vld [vmem:[#allocation2 + $0xc9] sm:$0xff]  ;;  %v815_v48 = vmul.f32 %v1888_v57, %v1788_v28 }
  0x76   : > { %2748 = vst [vmem:[#allocation21_spill] sm:$0xff] %v2015_v9 }
  0x77   : > { %315 = vst.msk [vmem:[#allocation2 + $0x139] sm:$0xff] %vm290_vm3, %v281_v47  ;;  %v950_v47 = vadd.f32 %v918_v13, %v852_v24  ;;  %v2045_v13 = vld [vmem:[#allocation2 + $0xc8] sm:$0xff]  ;;  %v653_v24 = vadd.f32 %v621_v53, %v556_v18  ;;  %v440_v53 = vmul.f32 %v1770_v10, %v2051_v19  ;;  %v1107_v18 = vmul.f32 %v1799_v35, %v1866_v31 }
  0x78   : > { %316 = vst.msk [vmem:[#allocation2 + $0x141] sm:$0xff] %vm290_vm3, %v282_v63  ;;  %v465_v63 = vadd.f32 %v433_v52, %v368_v5  ;;  %v537_v52 = vmul.f32 %v1772_v12, %v2053_v3 }
  0x79   : > { %317 = vst.msk [vmem:[#allocation2 + $0x151] sm:$0xff] %vm290_vm3, %v283_v6  ;;  %v1047_v11 = vadd.f32 %v1015_v62, %v950_v47  ;;  %v859_v6 = vadd.f32 %v827_v43, %v762_v33  ;;  %v375_v62 = vmul.f32 %v1767_v8, %v2045_v13  ;;  %v750_v5 = vadd.f32 %v718_v39, %v653_v24  ;;  %v2065_v43 = vld [vmem:[#allocation2 + $0xa8] sm:$0xff] }
  0x7a   : > { %2749 = vst [vmem:[#allocation22_spill] sm:$0xff] %v2045_v13  ;;  %v562_v59 = vadd.f32 %v530_v4, %v465_v63  ;;  %v1010_v33 = vmul.f32 %v1805_v42, %v1854_v21  ;;  %v821_v39 = vmul.f32 %v1929_v29, %v1788_v28  ;;  %v2080_v63 = vld [vmem:[#allocation2 + $0xa9] sm:$0xff]  ;;  %v634_v24 = vmul.f32 %v1778_v16, %v2063_v45 }
  0x7b   : > { %318 = vst.msk [vmem:[#allocation2 + $0x159] sm:$0xff] %vm290_vm3, %v284_v25  ;;  %v913_v25 = vmul.f32 %v1794_v34, %v1852_v20  ;;  %v1144_v58 = vadd.f32 %v1112_v0, %v1047_v11  ;;  %v957_v47 = vadd.f32 %v925_v15, %v859_v6  ;;  %v2071_v0 = vld [vmem:[#allocation2 + $0xe1] sm:$0xff]  ;;  %v847_v11 = vadd.f32 %v815_v48, %v750_v5  ;;  %v2094_v5 = vld [vmem:[#allocation2 + $0xf8] sm:$0xff] }
  0x7c   : > { %2750 = vst [vmem:[#allocation23_spill] sm:$0xff] %v2051_v19  ;;  %v659_v15 = vadd.f32 %v627_v14, %v562_v59  ;;  %v472_v6 = vadd.f32 %v440_v53, %v375_v62  ;;  %v919_v19 = vmul.f32 %v1794_v34, %v2065_v43  ;;  %v731_v14 = vmul.f32 %v1780_v17, %v2071_v0  ;;  %v2096_v53 = vld [vmem:[#allocation2 + $0xf9] sm:$0xff] }
  0x7d   : > { %2751 = vst [vmem:[#allocation24_spill] sm:$0xff] %v2053_v3  ;;  %1605 = vmatmul.msk.f32.gmra.mxu1 %vm290_vm3, %v1144_v58  ;;  %v1054_v4 = vadd.f32 %v1022_v46, %v957_v47  ;;  %v2084_v3 = vld [vmem:[#allocation2 + $0xe2] sm:$0xff]  ;;  %v363_v59 = vmul.f32 %v1818_v54, %v1767_v8  ;;  %v945_v48 = vadd.f32 %v913_v25, %v847_v11  ;;  %v2092_v47 = vld [vmem:[#allocation2 + $0xaa] sm:$0xff] }
  0x7e   : > { %2752 = vst [vmem:[#allocation25_spill] sm:$0xff] %v2063_v45  ;;  %v756_v58 = vadd.f32 %v724_v2, %v659_v15  ;;  %v569_v62 = vadd.f32 %v537_v52, %v472_v6  ;;  %v428_v2 = vmul.f32 %v1820_v55, %v1770_v10  ;;  %1599 = vmatmul.msk.f32.gmra.mxu0 %vm290_vm3, %v1138_v26 }
  0x7f   : > { %2753 = vst [vmem:[#allocation26_spill] sm:$0xff] %v2071_v0  ;;  %v1151_v46 = vadd.f32 %v1119_v1, %v1054_v4  ;;  %v1016_v13 = vmul.f32 %v1805_v42, %v2080_v63  ;;  %v828_v54 = vmul.f32 %v1788_v28, %v2084_v3  ;;  %v525_v1 = vmul.f32 %v1877_v41, %v1772_v12 }
  0x80   : > { %2754 = vst [vmem:[#allocation27_spill] sm:$0xff] %v2084_v3  ;;  %v853_v15 = vadd.f32 %v821_v39, %v756_v58  ;;  %v1042_v25 = vadd.f32 %v1010_v33, %v945_v48  ;;  %v666_v52 = vadd.f32 %v634_v24, %v569_v62  ;;  %v460_v4 = vadd.f32 %v428_v2, %v363_v59  ;;  %v2116_v58 = vld [vmem:[#allocation2 + $0xfa] sm:$0xff] }
  0x81   : > { %1612 = vmatmul.msk.f32.vlgmr.msra.gmra.mxu2 %vm290_vm3, %v1151_v46  ;;  %v622_v55 = vmul.f32 %v1923_v22, %v1778_v16  ;;  %v1113_v26 = vmul.f32 %v1799_v35, %v2092_v47  ;;  %v926_v39 = vmul.f32 %v1794_v34, %v2094_v5  ;;  %v1023_v6 = vmul.f32 %v1805_v42, %v2096_v53 }
  0x82   : > { %v951_v11 = vadd.f32 %v919_v19, %v853_v15  ;;  %v763_v41 = vadd.f32 %v731_v14, %v666_v52  ;;  %v557_v46 = vadd.f32 %v525_v1, %v460_v4  ;;  %v719_v33 = vmul.f32 %v1931_v30, %v1780_v17  ;;  %v2755_v1 = vld [vmem:[#allocation9_spill] sm:$0xff]  ;;  %v2756_v30 = vld [vmem:[#allocation3_spill] sm:$0xff] }
  0x83   : > { %v369_v24 = vmul.f32 %v1925_v23, %v1767_v8  ;;  %v1139_v19 = vadd.f32 %v1107_v18, %v1042_v25  ;;  %v434_v48 = vmul.f32 %v1937_v38, %v1770_v10  ;;  %v531_v62 = vmul.f32 %v1946_v49, %v1772_v12  ;;  %v2757_v49 = vld [vmem:[#allocation14_spill] sm:$0xff] }
  0x84   : > { %v1048_v59 = vadd.f32 %v1016_v13, %v951_v11  ;;  %v860_v2 = vadd.f32 %v828_v54, %v763_v41  ;;  %v1120_v15 = vmul.f32 %v1799_v35, %v2116_v58  ;;  %v654_v14 = vadd.f32 %v622_v55, %v557_v46  ;;  %v2758_v41 = vld [vmem:[#allocation16_spill] sm:$0xff] }
  0x85   : > { %v816_v52 = vmul.f32 %v2755_v1, %v1788_v28  ;;  %v914_v23 = vmul.f32 %v1794_v34, %v2756_v30  ;;  %v466_v18 = vadd.f32 %v434_v48, %v369_v24  ;;  %v628_v13 = vmul.f32 %v1955_v61, %v1778_v16 }
  0x86   : > { %v1145_v4 = vadd.f32 %v1113_v26, %v1048_v59  ;;  %v958_v25 = vadd.f32 %v926_v39, %v860_v2  ;;  %v751_v11 = vadd.f32 %v719_v33, %v654_v14  ;;  %v725_v54 = vmul.f32 %v2757_v49, %v1780_v17  ;;  %1600 = vmatmul.msk.f32.gmra.mxu0 %vm290_vm3, %v1139_v19  ;;  %v2140_v26 = vld [vmem:[#allocation2 + $0xb0] sm:$0xff]  ;;  %v2759_v59 = vld [vmem:[#allocation4_spill] sm:$0xff]  ;;  %v2760_v2 = vld [vmem:[#allocation5_spill] sm:$0xff] }
  0x87   : > { %v376_v38 = vmul.f32 %v2758_v41, %v1767_v8  ;;  %v563_v55 = vadd.f32 %v531_v62, %v466_v18  ;;  %v441_v46 = vmul.f32 %v1992_v50, %v1770_v10  ;;  %v538_v39 = vmul.f32 %v2001_v40, %v1772_v12  ;;  %v2150_v14 = vld [vmem:[#allocation2 + $0x120] sm:$0xff]  ;;  %v2763_v18 = vld [vmem:[#allocation15_spill] sm:$0xff] }
  0x88   : > { %1606 = vmatmul.msk.f32.gmra.mxu1 %vm290_vm3, %v1145_v4  ;;  %v1055_v33 = vadd.f32 %v1023_v6, %v958_v25  ;;  %v848_v24 = vadd.f32 %v816_v52, %v751_v11  ;;  %v1011_v48 = vmul.f32 %v1805_v42, %v2759_v59  ;;  %v1108_v19 = vmul.f32 %v1799_v35, %v2760_v2  ;;  %v2152_v62 = vld [vmem:[#allocation2 + $0x121] sm:$0xff]  ;;  %v2156_v41 = vld [vmem:[#allocation2 + $0xb1] sm:$0xff] }
  0x89   : > { %2761 = vst [vmem:[#allocation9_spill] sm:$0xff] %v2150_v14  ;;  %v660_v4 = vadd.f32 %v628_v13, %v563_v55  ;;  %v822_v50 = vmul.f32 %v2763_v18, %v1788_v28  ;;  %v473_v40 = vadd.f32 %v441_v46, %v376_v38  ;;  %v635_v6 = vmul.f32 %v2003_v56, %v1778_v16  ;;  %v2160_v52 = vld [vmem:[#allocation2 + $0x122] sm:$0xff]  ;;  %v2166_v13 = vld [vmem:[#allocation2 + $0x138] sm:$0xff] }
  0x8a   : > { %2762 = vst [vmem:[#allocation3_spill] sm:$0xff] %v2152_v62  ;;  %v1152_v25 = vadd.f32 %v1120_v15, %v1055_v33  ;;  %v946_v11 = vadd.f32 %v914_v23, %v848_v24  ;;  %v920_v2 = vmul.f32 %v1794_v34, %v2140_v26  ;;  %v732_v49 = vmul.f32 %v2007_v32, %v1780_v17  ;;  %v285_v55 = vld [vmem:[%s1691_s21 + $0xe0] sm:$0xff]  ;;  %v2169_v59 = vld [vmem:[#allocation2 + $0xb2] sm:$0xff]  ;;  %v2171_v46 = vld [vmem:[#allocation2 + $0x108] sm:$0xff] }
  0x8b   : > { %2764 = vst [vmem:[#allocation28_spill] sm:$0xff] %v2160_v52  ;;  %v757_v18 = vadd.f32 %v725_v54, %v660_v4  ;;  %v570_v38 = vadd.f32 %v538_v39, %v473_v40  ;;  %v382_v56 = vmul.f32 %v1767_v8, %v2150_v14  ;;  %v447_v23 = vmul.f32 %v1770_v10, %v2152_v62  ;;  %v2177_v15 = vld [vmem:[#allocation2 + $0x139] sm:$0xff]  ;;  %v2187_v62 = vld [vmem:[#allocation2 + $0x109] sm:$0xff] }
  0x8c   : > { %2765 = vst [vmem:[#allocation29_spill] sm:$0xff] %v2166_v13  ;;  %1613 = vmatmul.msk.f32.gmra.mxu2 %vm290_vm3, %v1152_v25  ;;  %v1043_v33 = vadd.f32 %v1011_v48, %v946_v11  ;;  %v1017_v54 = vmul.f32 %v1805_v42, %v2156_v41  ;;  %v829_v40 = vmul.f32 %v2015_v9, %v1788_v28  ;;  %v2189_v14 = vld [vmem:[#allocation2 + $0x10a] sm:$0xff] }
  0x8d   : > { %2766 = vst [vmem:[#allocation30_spill] sm:$0xff] %v2177_v15  ;;  %v544_v39 = vmul.f32 %v1772_v12, %v2160_v52  ;;  %v854_v24 = vadd.f32 %v822_v50, %v757_v18  ;;  %v667_v4 = vadd.f32 %v635_v6, %v570_v38  ;;  %v641_v25 = vmul.f32 %v1778_v16, %v2166_v13  ;;  %v2199_v50 = vld [vmem:[#allocation2 + $0x13a] sm:$0xff]  ;;  %v286_v18 = vld [vmem:[%s1691_s21 + $0xe8] sm:$0xff] }
  0x8e   : > { %319 = vst.msk [vmem:[#allocation2 + $0x169] sm:$0xff] %vm290_vm3, %v285_v55  ;;  %v479_v55 = vadd.f32 %v447_v23, %v382_v56  ;;  %v1140_v48 = vadd.f32 %v1108_v19, %v1043_v33  ;;  %v1114_v11 = vmul.f32 %v1799_v35, %v2169_v59  ;;  %v927_v9 = vmul.f32 %v1794_v34, %v2171_v46  ;;  %v2202_v56 = vld [vmem:[#allocation2 + $0x150] sm:$0xff] }
  0x8f   : > { %2767 = vst [vmem:[#allocation31_spill] sm:$0xff] %v2189_v14  ;;  %v738_v52 = vmul.f32 %v1780_v17, %v2177_v15  ;;  %v952_v6 = vadd.f32 %v920_v2, %v854_v24  ;;  %v764_v38 = vadd.f32 %v732_v49, %v667_v4  ;;  %v2204_v23 = vld [vmem:[#allocation2 + $0x151] sm:$0xff]  ;;  %v364_v19 = vmul.f32 %v1860_v27, %v1767_v8 }
  0x90   : > { %2768 = vst [vmem:[#allocation32_spill] sm:$0xff] %v2199_v50  ;;  %v576_v32 = vadd.f32 %v544_v39, %v479_v55  ;;  %1601 = vmatmul.msk.f32.gmra.mxu0 %vm290_vm3, %v1140_v48  ;;  %v1024_v33 = vmul.f32 %v1805_v42, %v2187_v62  ;;  %v1121_v15 = vmul.f32 %v1799_v35, %v2189_v14 }
  0x91   : > { %2769 = vst [vmem:[#allocation33_spill] sm:$0xff] %v2202_v56  ;;  %v429_v49 = vmul.f32 %v1879_v44, %v1770_v10  ;;  %v526_v2 = vmul.f32 %v1888_v57, %v1772_v12  ;;  %v1049_v39 = vadd.f32 %v1017_v54, %v952_v6  ;;  %v861_v24 = vadd.f32 %v829_v40, %v764_v38 }
  0x92   : > { %320 = vst.msk [vmem:[#allocation2 + $0x171] sm:$0xff] %vm290_vm3, %v286_v18  ;;  %v673_v4 = vadd.f32 %v641_v25, %v576_v32  ;;  %v835_v27 = vmul.f32 %v1788_v28, %v2199_v50  ;;  %v933_v55 = vmul.f32 %v1794_v34, %v2202_v56  ;;  %v1030_v48 = vmul.f32 %v1805_v42, %v2204_v23  ;;  %v2224_v18 = vld [vmem:[#allocation2 + $0x152] sm:$0xff] }
  0x93   : > { %v461_v14 = vadd.f32 %v429_v49, %v364_v19  ;;  %v623_v44 = vmul.f32 %v1778_v16, %v1852_v20  ;;  %v1146_v13 = vadd.f32 %v1114_v11, %v1049_v39  ;;  %v959_v57 = vadd.f32 %v927_v9, %v861_v24  ;;  %v2253_v39 = vld [vmem:[#allocation2 + $0x128] sm:$0xff] }
  0x94   : > { %v770_v54 = vadd.f32 %v738_v52, %v673_v4  ;;  %v370_v32 = vmul.f32 %v1892_v60, %v1767_v8  ;;  %v720_v25 = vmul.f32 %v1780_v17, %v1854_v21  ;;  %v435_v6 = vmul.f32 %v1908_v7, %v1770_v10  ;;  %2770 = vst [vmem:[#allocation34_spill] sm:$0xff] %v2253_v39 }
  0x95   : > { %v558_v40 = vadd.f32 %v526_v2, %v461_v14  ;;  %v532_v38 = vmul.f32 %v1929_v29, %v1772_v12  ;;  %1607 = vmatmul.msk.f32.gmra.mxu1 %vm290_vm3, %v1146_v13  ;;  %v1056_v19 = vadd.f32 %v1024_v33, %v959_v57  ;;  %v1127_v9 = vmul.f32 %v1799_v35, %v2224_v18 }
  0x96   : > { %v867_v20 = vadd.f32 %v835_v27, %v770_v54  ;;  %v817_v60 = vmul.f32 %v1788_v28, %v1866_v31  ;;  %v915_v21 = vmul.f32 %v1794_v34, %v1871_v36  ;;  %v467_v52 = vadd.f32 %v435_v6, %v370_v32 }
  0x97   : > { %v655_v14 = vadd.f32 %v623_v44, %v558_v40  ;;  %v629_v7 = vmul.f32 %v2065_v43, %v1778_v16  ;;  %v1153_v11 = vadd.f32 %v1121_v15, %v1056_v19  ;;  %v726_v13 = vmul.f32 %v2080_v63, %v1780_v17  ;;  %v2266_v40 = vld [vmem:[#allocation2 + $0x12a] sm:$0xff] }
  0x98   : > { %v965_v29 = vadd.f32 %v933_v55, %v867_v20  ;;  %v377_v33 = vmul.f32 %v2063_v45, %v1767_v8  ;;  %v564_v2 = vadd.f32 %v532_v38, %v467_v52  ;;  %v442_v31 = vmul.f32 %v2071_v0, %v1770_v10  ;;  %v2262_v55 = vld [vmem:[#allocation2 + $0x129] sm:$0xff]  ;;  %2772 = vst [vmem:[#allocation36_spill] sm:$0xff] %v2266_v40 }
  0x99   : > { %v752_v49 = vadd.f32 %v720_v25, %v655_v14  ;;  %v539_v36 = vmul.f32 %v2084_v3, %v1772_v12  ;;  %1614 = vmatmul.msk.f32.gmra.mxu2 %vm290_vm3, %v1153_v11  ;;  %v1012_v24 = vmul.f32 %v1805_v42, %v1873_v37  ;;  %v1109_v4 = vmul.f32 %v1799_v35, %v1886_v51  ;;  %v2773_v37 = vld [vmem:[#allocation11_spill] sm:$0xff]  ;;  %v2301_v3 = vld [vmem:[#allocation2 + $0x142] sm:$0xff] }
  0x9a   : > { %v1062_v15 = vadd.f32 %v1030_v48, %v965_v29  ;;  %v823_v27 = vmul.f32 %v2092_v47, %v1788_v28  ;;  %2771 = vst [vmem:[#allocation35_spill] sm:$0xff] %v2262_v55  ;;  %v661_v57 = vadd.f32 %v629_v7, %v564_v2  ;;  %v474_v54 = vadd.f32 %v442_v31, %v377_v33  ;;  %v2268_v48 = vld [vmem:[#allocation2 + $0x140] sm:$0xff]  ;;  %v2276_v14 = vld [vmem:[#allocation2 + $0x110] sm:$0xff] }
  0x9b   : > { %v849_v44 = vadd.f32 %v817_v60, %v752_v49  ;;  %v636_v32 = vmul.f32 %v2094_v5, %v1778_v16  ;;  %v921_v6 = vmul.f32 %v1794_v34, %v2773_v37  ;;  %v733_v51 = vmul.f32 %v2096_v53, %v1780_v17  ;;  %v2280_v7 = vld [vmem:[#allocation2 + $0x141] sm:$0xff]  ;;  %v2291_v31 = vld [vmem:[#allocation2 + $0x111] sm:$0xff] }
  0x9c   : > { %v1159_v25 = vadd.f32 %v1127_v9, %v1062_v15  ;;  %v383_v38 = vmul.f32 %v1767_v8, %v2253_v39  ;;  %v758_v20 = vadd.f32 %v726_v13, %v661_v57  ;;  %v571_v60 = vadd.f32 %v539_v36, %v474_v54  ;;  %v2774_v9 = vld [vmem:[#allocation12_spill] sm:$0xff]  ;;  %v2777_v45 = vld [vmem:[#allocation7_spill] sm:$0xff] }
  0x9d   : > { %v947_v19 = vadd.f32 %v915_v21, %v849_v44  ;;  %v448_v52 = vmul.f32 %v1770_v10, %v2262_v55  ;;  %v1018_v11 = vmul.f32 %v1805_v42, %v2774_v9  ;;  %v830_v29 = vmul.f32 %v2116_v58, %v1788_v28  ;;  %v2293_v36 = vld [vmem:[#allocation2 + $0x112] sm:$0xff]  ;;  %v2775_v44 = vld [vmem:[#allocation13_spill] sm:$0xff]  ;;  %v2779_v55 = vld [vmem:[#allocation14_spill] sm:$0xff] }
  0x9e   : > { %1620 = vmatmul.msk.f32.vlgmr.msra.gmra.mxu3 %vm290_vm3, %v1159_v25  ;;  %v545_v21 = vmul.f32 %v1772_v12, %v2266_v40  ;;  %v642_v13 = vmul.f32 %v1778_v16, %v2268_v48  ;;  %v855_v49 = vadd.f32 %v823_v27, %v758_v20  ;;  %v668_v2 = vadd.f32 %v636_v32, %v571_v60  ;;  %v2305_v60 = vld [vmem:[#allocation2 + $0x158] sm:$0xff]  ;;  %v2780_v39 = vld [vmem:[#allocation15_spill] sm:$0xff] }
  0x9f   : > { %v1044_v33 = vadd.f32 %v1012_v24, %v947_v19  ;;  %v480_v15 = vadd.f32 %v448_v52, %v383_v38  ;;  %v1115_v57 = vmul.f32 %v1799_v35, %v2775_v44  ;;  %v928_v54 = vmul.f32 %v1794_v34, %v2276_v14  ;;  %v2307_v38 = vld [vmem:[#allocation2 + $0x159] sm:$0xff] }
  0xa0   : > { %v739_v25 = vmul.f32 %v1780_v17, %v2280_v7  ;;  %v365_v24 = vmul.f32 %v1923_v22, %v1767_v8  ;;  %v953_v32 = vadd.f32 %v921_v6, %v855_v49  ;;  %v765_v19 = vadd.f32 %v733_v51, %v668_v2  ;;  %2776 = vst [vmem:[#allocation11_spill] sm:$0xff] %v2307_v38  ;;  %v2324_v2 = vld [vmem:[#allocation2 + $0x15a] sm:$0xff] }
  0xa1   : > { %v1141_v27 = vadd.f32 %v1109_v4, %v1044_v33  ;;  %v577_v20 = vadd.f32 %v545_v21, %v480_v15  ;;  %v1025_v52 = vmul.f32 %v1805_v42, %v2291_v31  ;;  %v1122_v0 = vmul.f32 %v1799_v35, %v2293_v36 }
  0xa2   : > { %v430_v40 = vmul.f32 %v2777_v45, %v1770_v10  ;;  %v527_v22 = vmul.f32 %v2755_v1, %v1772_v12  ;;  %v1050_v4 = vadd.f32 %v1018_v11, %v953_v32  ;;  %v862_v6 = vadd.f32 %v830_v29, %v765_v19  ;;  %v2778_v19 = vld [vmem:[#allocation4_spill] sm:$0xff] }
  0xa3   : > { %1602 = vmatmul.msk.f32.gmra.mxu0 %vm290_vm3, %v1141_v27  ;;  %v674_v51 = vadd.f32 %v642_v13, %v577_v20  ;;  %v836_v21 = vmul.f32 %v1788_v28, %v2301_v3  ;;  %v934_v33 = vmul.f32 %v1794_v34, %v2305_v60  ;;  %v1031_v49 = vmul.f32 %v1805_v42, %v2307_v38  ;;  %v287_v13 = vld [vmem:[%s1691_s21 + $0xf0] sm:$0xff] }
  0xa4   : > { %v462_v45 = vadd.f32 %v430_v40, %v365_v24  ;;  %v624_v1 = vmul.f32 %v1778_v16, %v2756_v30  ;;  %v1147_v15 = vadd.f32 %v1115_v57, %v1050_v4  ;;  %v960_v27 = vadd.f32 %v928_v54, %v862_v6  ;;  %321 = vst.msk [vmem:[#allocation2 + $0x181] sm:$0xff] %vm290_vm3, %v287_v13  ;;  %v2781_v54 = vld [vmem:[#allocation5_spill] sm:$0xff] }
  0xa5   : > { %v771_v11 = vadd.f32 %v739_v25, %v674_v51  ;;  %v371_v29 = vmul.f32 %v1955_v61, %v1767_v8  ;;  %v721_v20 = vmul.f32 %v1780_v17, %v2778_v19  ;;  %v436_v38 = vmul.f32 %v2779_v55, %v1770_v10  ;;  %v2787_v19 = vld [vmem:[#allocation10_spill] sm:$0xff] }
  0xa6   : > { %v559_v32 = vadd.f32 %v527_v22, %v462_v45  ;;  %v533_v40 = vmul.f32 %v2780_v39, %v1772_v12  ;;  %1608 = vmatmul.msk.f32.gmra.mxu1 %vm290_vm3, %v1147_v15  ;;  %v1057_v30 = vadd.f32 %v1025_v52, %v960_v27  ;;  %v1128_v61 = vmul.f32 %v1799_v35, %v2324_v2  ;;  %v2782_v22 = vld [vmem:[#allocation6_spill] sm:$0xff]  ;;  %v288_v15 = vld [vmem:[%s1691_s21 + $0xf8] sm:$0xff] }
  0xa7   : > { %v868_v57 = vadd.f32 %v836_v21, %v771_v11  ;;  %v818_v25 = vmul.f32 %v1788_v28, %v2781_v54  ;;  %v916_v55 = vmul.f32 %v1794_v34, %v2782_v22  ;;  %v468_v4 = vadd.f32 %v436_v38, %v371_v29  ;;  %v2783_v21 = vld [vmem:[#allocation19_spill] sm:$0xff]  ;;  %322 = vst.msk [vmem:[#allocation2 + $0x189] sm:$0xff] %vm290_vm3, %v288_v15 }
  0xa8   : > { %v656_v24 = vadd.f32 %v624_v1, %v559_v32  ;;  %v630_v39 = vmul.f32 %v2140_v26, %v1778_v16  ;;  %v1154_v6 = vadd.f32 %v1122_v0, %v1057_v30  ;;  %v727_v52 = vmul.f32 %v2156_v41, %v1780_v17  ;;  %v2784_v1 = vld [vmem:[#allocation20_spill] sm:$0xff]  ;;  %v2785_v32 = vld [vmem:[#allocation21_spill] sm:$0xff] }
  0xa9   : > { %v966_v51 = vadd.f32 %v934_v33, %v868_v57  ;;  %v378_v45 = vmul.f32 %v2783_v21, %v1767_v8  ;;  %v565_v11 = vadd.f32 %v533_v40, %v468_v4  ;;  %v443_v13 = vmul.f32 %v2784_v1, %v1770_v10  ;;  %v2786_v33 = vld [vmem:[#allocation8_spill] sm:$0xff]  ;;  %v2788_v4 = vld [vmem:[#allocation22_spill] sm:$0xff] }
  0xaa   : > { %v753_v27 = vadd.f32 %v721_v20, %v656_v24  ;;  %v540_v38 = vmul.f32 %v2785_v32, %v1772_v12  ;;  %1615 = vmatmul.msk.f32.gmra.mxu2 %vm290_vm3, %v1154_v6  ;;  %v1013_v29 = vmul.f32 %v1805_v42, %v2786_v33  ;;  %v1110_v30 = vmul.f32 %v1799_v35, %v2787_v19  ;;  %v2793_v19 = vld [vmem:[#allocation24_spill] sm:$0xff] }
  0xab   : > { %v1063_v0 = vadd.f32 %v1031_v49, %v966_v51  ;;  %v824_v20 = vmul.f32 %v2169_v59, %v1788_v28  ;;  %v662_v57 = vadd.f32 %v630_v39, %v565_v11  ;;  %v475_v54 = vadd.f32 %v443_v13, %v378_v45  ;;  %v2789_v51 = vld [vmem:[#allocation29_spill] sm:$0xff]  ;;  %v2791_v45 = vld [vmem:[#allocation23_spill] sm:$0xff] }
  0xac   : > { %v850_v40 = vadd.f32 %v818_v25, %v753_v27  ;;  %v637_v24 = vmul.f32 %v2171_v46, %v1778_v16  ;;  %v922_v6 = vmul.f32 %v1794_v34, %v2788_v4  ;;  %v734_v49 = vmul.f32 %v2187_v62, %v1780_v17  ;;  %v2790_v25 = vld [vmem:[#allocation30_spill] sm:$0xff]  ;;  %v2792_v27 = vld [vmem:[#allocation31_spill] sm:$0xff] }
  0xad   : > { %v1160_v22 = vadd.f32 %v1128_v61, %v1063_v0  ;;  %v384_v21 = vmul.f32 %v2789_v51, %v1767_v8  ;;  %v759_v1 = vadd.f32 %v727_v52, %v662_v57  ;;  %v572_v32 = vadd.f32 %v540_v38, %v475_v54  ;;  %v2794_v57 = vld [vmem:[#allocation9_spill] sm:$0xff] }
  0xae   : > { %v948_v15 = vadd.f32 %v916_v55, %v850_v40  ;;  %v449_v39 = vmul.f32 %v2790_v25, %v1770_v10  ;;  %v1019_v61 = vmul.f32 %v1805_v42, %v2791_v45  ;;  %v831_v11 = vmul.f32 %v2792_v27, %v1788_v28 }
  0xaf   : > { %1621 = vmatmul.msk.f32.gmra.mxu3 %vm290_vm3, %v1160_v22  ;;  %v546_v13 = vmul.f32 %v2199_v50, %v1772_v12  ;;  %v643_v0 = vmul.f32 %v2202_v56, %v1778_v16  ;;  %v856_v52 = vadd.f32 %v824_v20, %v759_v1  ;;  %v669_v38 = vadd.f32 %v637_v24, %v572_v32  ;;  %v2393_v20 = vld [vmem:[#allocation2 + $0x169] sm:$0xff] }
  0xb0   : > { %v1045_v55 = vadd.f32 %v1013_v29, %v948_v15  ;;  %v481_v33 = vadd.f32 %v449_v39, %v384_v21  ;;  %v1116_v40 = vmul.f32 %v1799_v35, %v2793_v19  ;;  %v929_v54 = vmul.f32 %v1794_v34, %v2794_v57  ;;  %v2391_v29 = vld [vmem:[#allocation2 + $0x168] sm:$0xff]  ;;  %v2795_v24 = vld [vmem:[#allocation3_spill] sm:$0xff]  ;;  %v2796_v15 = vld [vmem:[#allocation28_spill] sm:$0xff] }
  0xb1   : > { %v740_v22 = vmul.f32 %v2204_v23, %v1780_v17  ;;  %v372_v25 = vmul.f32 %v2065_v43, %v1767_v8  ;;  %v954_v51 = vadd.f32 %v922_v6, %v856_v52  ;;  %v766_v27 = vadd.f32 %v734_v49, %v669_v38  ;;  %v2426_v38 = vld [vmem:[%s2666_s1 + $0x8] ss:$0 sm:$0xff] }
  0xb2   : > { %v1142_v50 = vadd.f32 %v1110_v30, %v1045_v55  ;;  %v578_v56 = vadd.f32 %v546_v13, %v481_v33  ;;  %v1026_v21 = vmul.f32 %v1805_v42, %v2795_v24  ;;  %v1123_v1 = vmul.f32 %v1799_v35, %v2796_v15  ;;  %v2410_v55 = vld [vmem:[#allocation2 + $0x16a] sm:$0xff] }
  0xb3   : > { %v437_v32 = vmul.f32 %v2080_v63, %v1770_v10  ;;  %v534_v43 = vmul.f32 %v2092_v47, %v1772_v12  ;;  %v1051_v30 = vadd.f32 %v1019_v61, %v954_v51  ;;  %v863_v6 = vadd.f32 %v831_v11, %v766_v27 }
  0xb4   : > { %1603 = vmatmul.msk.f32.gmra.mxu0 %vm290_vm3, %v1142_v50  ;;  %v675_v49 = vadd.f32 %v643_v0, %v578_v56  ;;  %v837_v39 = vmul.f32 %v2224_v18, %v1788_v28  ;;  %v935_v13 = vmul.f32 %v1794_v34, %v2391_v29  ;;  %v1032_v35 = vmul.f32 %v1805_v42, %v2393_v20 }
  0xb5   : > { %v469_v63 = vadd.f32 %v437_v32, %v372_v25  ;;  %v631_v47 = vmul.f32 %v1778_v16, %v2773_v37  ;;  %v1148_v52 = vadd.f32 %v1116_v40, %v1051_v30  ;;  %v961_v50 = vadd.f32 %v929_v54, %v863_v6 }
  0xb6   : > { %v772_v51 = vadd.f32 %v740_v22, %v675_v49  ;;  %v379_v56 = vmul.f32 %v2094_v5, %v1767_v8  ;;  %v728_v27 = vmul.f32 %v1780_v17, %v2774_v9  ;;  %v444_v11 = vmul.f32 %v2096_v53, %v1770_v10  ;;  %v2797_v53 = vld [vmem:[#allocation16_spill] sm:$0xff] }
  0xb7   : > { %v566_v61 = vadd.f32 %v534_v43, %v469_v63  ;;  %v541_v0 = vmul.f32 %v2116_v58, %v1772_v12  ;;  %1609 = vmatmul.msk.f32.gmra.mxu1 %vm290_vm3, %v1148_v52  ;;  %v1058_v25 = vadd.f32 %v1026_v21, %v961_v50  ;;  %v1129_v5 = vmul.f32 %v2426_v38, %v2410_v55  ;;  %v2798_v63 = vld [vmem:[#allocation17_spill] sm:$0xff] }
  0xb8   : > { %v869_v37 = vadd.f32 %v837_v39, %v772_v51  ;;  %v825_v9 = vmul.f32 %v1788_v28, %v2775_v44  ;;  %v923_v40 = vmul.f32 %v1794_v34, %v2797_v53  ;;  %v476_v58 = vadd.f32 %v444_v11, %v379_v56  ;;  %v2800_v11 = vld [vmem:[#allocation34_spill] sm:$0xff] }
  0xb9   : > { %v663_v33 = vadd.f32 %v631_v47, %v566_v61  ;;  %v638_v54 = vmul.f32 %v2276_v14, %v1778_v16  ;;  %v1155_v22 = vadd.f32 %v1123_v1, %v1058_v25  ;;  %v735_v32 = vmul.f32 %v2291_v31, %v1780_v17 }
  0xba   : > { %v967_v21 = vadd.f32 %v935_v13, %v869_v37  ;;  %v385_v43 = vmul.f32 %v2268_v48, %v1767_v8  ;;  %v573_v6 = vadd.f32 %v541_v0, %v476_v58  ;;  %v450_v44 = vmul.f32 %v2280_v7, %v1770_v10  ;;  %v2799_v13 = vld [vmem:[#allocation18_spill] sm:$0xff] }
  0xbb   : > { %v760_v30 = vadd.f32 %v728_v27, %v663_v33  ;;  %v547_v49 = vmul.f32 %v2301_v3, %v1772_v12  ;;  %1616 = vmatmul.msk.f32.gmra.mxu2 %vm290_vm3, %v1155_v22  ;;  %v1020_v1 = vmul.f32 %v1805_v42, %v2798_v63  ;;  %v1117_v47 = vmul.f32 %v2426_v38, %v2799_v13  ;;  %v2459_v22 = vld [vmem:[#allocation2 + $0x170] sm:$0xff] }
  0xbc   : > { %v1064_v39 = vadd.f32 %v1032_v35, %v967_v21  ;;  %v832_v52 = vmul.f32 %v2293_v36, %v1788_v28  ;;  %v670_v51 = vadd.f32 %v638_v54, %v573_v6  ;;  %v482_v56 = vadd.f32 %v450_v44, %v385_v43  ;;  %v2801_v35 = vld [vmem:[#allocation11_spill] sm:$0xff] }
  0xbd   : > { %v857_v50 = vadd.f32 %v825_v9, %v760_v30  ;;  %v644_v61 = vmul.f32 %v2305_v60, %v1778_v16  ;;  %v930_v0 = vmul.f32 %v1794_v34, %v2800_v11  ;;  %v741_v25 = vmul.f32 %v2801_v35, %v1780_v17  ;;  %v2472_v6 = vld [vmem:[#allocation2 + $0x171] sm:$0xff] }
  0xbe   : > { %v1161_v27 = vadd.f32 %v1129_v5, %v1064_v39  ;;  %v373_v37 = vmul.f32 %v2140_v26, %v1767_v8  ;;  %v767_v53 = vadd.f32 %v735_v32, %v670_v51  ;;  %v579_v58 = vadd.f32 %v547_v49, %v482_v56  ;;  %v2802_v5 = vld [vmem:[#allocation35_spill] sm:$0xff]  ;;  %v2803_v49 = vld [vmem:[#allocation36_spill] sm:$0xff] }
  0xbf   : > { %v955_v33 = vadd.f32 %v923_v40, %v857_v50  ;;  %v438_v9 = vmul.f32 %v2156_v41, %v1770_v10  ;;  %v1027_v54 = vmul.f32 %v1805_v42, %v2802_v5  ;;  %v838_v21 = vmul.f32 %v2324_v2, %v1788_v28  ;;  %v2474_v41 = vld [vmem:[#allocation2 + $0x172] sm:$0xff] }
  0xc0   : > { %1622 = vmatmul.msk.f32.gmra.mxu3 %vm290_vm3, %v1161_v27  ;;  %v535_v43 = vmul.f32 %v2169_v59, %v1772_v12  ;;  %v632_v26 = vmul.f32 %v1778_v16, %v2788_v4  ;;  %v864_v32 = vadd.f32 %v832_v52, %v767_v53  ;;  %v676_v30 = vadd.f32 %v644_v61, %v579_v58  ;;  %v2804_v27 = vld [vmem:[#allocation31_spill] sm:$0xff]  ;;  %v2806_v53 = vld [vmem:[#allocation26_spill] sm:$0xff] }
  0xc1   : > { %v1052_v40 = vadd.f32 %v1020_v1, %v955_v33  ;;  %v470_v44 = vadd.f32 %v438_v9, %v373_v37  ;;  %v1124_v39 = vmul.f32 %v2426_v38, %v2803_v49  ;;  %v936_v63 = vmul.f32 %v1794_v34, %v2459_v22 }
  0xc2   : > { %v729_v59 = vmul.f32 %v1780_v17, %v2791_v45  ;;  %v380_v4 = vmul.f32 %v2171_v46, %v1767_v8  ;;  %v962_v13 = vadd.f32 %v930_v0, %v864_v32  ;;  %v773_v52 = vadd.f32 %v741_v25, %v676_v30  ;;  %v2805_v25 = vld [vmem:[#allocation25_spill] sm:$0xff] }
  0xc3   : > { %v1149_v1 = vadd.f32 %v1117_v47, %v1052_v40  ;;  %v567_v50 = vadd.f32 %v535_v43, %v470_v44  ;;  %v1033_v51 = vmul.f32 %v1805_v42, %v2472_v6  ;;  %v1130_v56 = vmul.f32 %v2426_v38, %v2474_v41 }
  0xc4   : > { %v445_v61 = vmul.f32 %v2187_v62, %v1770_v10  ;;  %v542_v37 = vmul.f32 %v2804_v27, %v1772_v12  ;;  %v1059_v45 = vadd.f32 %v1027_v54, %v962_v13  ;;  %v870_v46 = vadd.f32 %v838_v21, %v773_v52  ;;  %v2807_v54 = vld [vmem:[#allocation33_spill] sm:$0xff] }
  0xc5   : > { %1610 = vmatmul.msk.f32.gmra.mxu1 %vm290_vm3, %v1149_v1  ;;  %v664_v47 = vadd.f32 %v632_v26, %v567_v50  ;;  %v826_v0 = vmul.f32 %v1788_v28, %v2793_v19  ;;  %v924_v33 = vmul.f32 %v1794_v34, %v2805_v25  ;;  %v1021_v58 = vmul.f32 %v1805_v42, %v2806_v53  ;;  %v2809_v13 = vld [vmem:[#allocation29_spill] sm:$0xff]  ;;  %v2811_v25 = vld [vmem:[#allocation32_spill] sm:$0xff] }
  0xc6   : > { %v477_v9 = vadd.f32 %v445_v61, %v380_v4  ;;  %v639_v62 = vmul.f32 %v1778_v16, %v2794_v57  ;;  %v1156_v43 = vadd.f32 %v1124_v39, %v1059_v45  ;;  %v968_v40 = vadd.f32 %v936_v63, %v870_v46  ;;  %v2808_v39 = vld [vmem:[#allocation27_spill] sm:$0xff]  ;;  %v904_v45 = vld [vmem:[#allocation2 + $0x180] sm:$0xff] }
  0xc7   : > { %v761_v32 = vadd.f32 %v729_v59, %v664_v47  ;;  %v386_v21 = vmul.f32 %v2807_v54, %v1767_v8  ;;  %v736_v19 = vmul.f32 %v1780_v17, %v2795_v24  ;;  %v451_v30 = vmul.f32 %v2204_v23, %v1770_v10 }
  0xc8   : > { %v574_v26 = vadd.f32 %v542_v37, %v477_v9  ;;  %v548_v44 = vmul.f32 %v2224_v18, %v1772_v12  ;;  %1617 = vmatmul.msk.f32.gmra.mxu2 %vm290_vm3, %v1156_v43  ;;  %v1065_v4 = vadd.f32 %v1033_v51, %v968_v40  ;;  %v1118_v63 = vmul.f32 %v2426_v38, %v2808_v39 }
  0xc9   : > { %v858_v57 = vadd.f32 %v826_v0, %v761_v32  ;;  %v833_v59 = vmul.f32 %v1788_v28, %v2796_v15  ;;  %v931_v24 = vmul.f32 %v1794_v34, %v2809_v13  ;;  %v483_v52 = vadd.f32 %v451_v30, %v386_v21 }
  0xca   : > { %v671_v1 = vadd.f32 %v639_v62, %v574_v26  ;;  %v645_v23 = vmul.f32 %v2391_v29, %v1778_v16  ;;  %v1162_v50 = vadd.f32 %v1130_v56, %v1065_v4  ;;  %v742_v51 = vmul.f32 %v2393_v20, %v1780_v17  ;;  %v2810_v56 = vld [vmem:[#allocation30_spill] sm:$0xff] }
  0xcb   : > { %v956_v18 = vadd.f32 %v924_v33, %v858_v57  ;;  %v381_v61 = vmul.f32 %v2276_v14, %v1767_v8  ;;  %v580_v37 = vadd.f32 %v548_v44, %v483_v52  ;;  %v446_v15 = vmul.f32 %v2291_v31, %v1770_v10  ;;  %v1001_v62 = vld [vmem:[#allocation2 + $0x181] sm:$0xff] }
  0xcc   : > { %v768_v27 = vadd.f32 %v736_v19, %v671_v1  ;;  %v543_v46 = vmul.f32 %v2293_v36, %v1772_v12  ;;  %1623 = vmatmul.msk.f32.gmra.mxu3 %vm290_vm3, %v1162_v50  ;;  %v1028_v0 = vmul.f32 %v1805_v42, %v2810_v56  ;;  %v1125_v33 = vmul.f32 %v2426_v38, %v2811_v25  ;;  %v1098_v26 = vld [vmem:[#allocation2 + $0x182] sm:$0xff]  ;;  %v1099_v25 = vld [vmem:[#allocation2 + $0x18a] sm:$0xff] }
  0xcd   : > { %v1053_v47 = vadd.f32 %v1021_v58, %v956_v18  ;;  %v839_v14 = vmul.f32 %v2410_v55, %v1788_v28  ;;  %v677_v9 = vadd.f32 %v645_v23, %v580_v37  ;;  %v478_v43 = vadd.f32 %v446_v15, %v381_v61  ;;  %v905_v23 = vld [vmem:[#allocation2 + $0x188] sm:$0xff] }
  0xce   : > { %v865_v53 = vadd.f32 %v833_v59, %v768_v27  ;;  %v640_v31 = vmul.f32 %v1778_v16, %v2800_v11  ;;  %v937_v40 = vmul.f32 %v1794_v34, %v904_v45  ;;  %v737_v58 = vmul.f32 %v1780_v17, %v2802_v5 }
  0xcf   : > { %v1150_v36 = vadd.f32 %v1118_v63, %v1053_v47  ;;  %v387_v32 = vmul.f32 %v2305_v60, %v1767_v8  ;;  %v774_v21 = vadd.f32 %v742_v51, %v677_v9  ;;  %v575_v19 = vadd.f32 %v543_v46, %v478_v43 }
  0xd0   : > { %v963_v54 = vadd.f32 %v931_v24, %v865_v53  ;;  %v452_v30 = vmul.f32 %v2801_v35, %v1770_v10  ;;  %v1034_v11 = vmul.f32 %v1805_v42, %v1001_v62  ;;  %v834_v44 = vmul.f32 %v1788_v28, %v2803_v49 }
  0xd1   : > { %1611 = vmatmul.msk.f32.gmra.mxu1 %vm290_vm3, %v1150_v36  ;;  %v549_v5 = vmul.f32 %v2324_v2, %v1772_v12  ;;  %v646_v60 = vmul.f32 %v2459_v22, %v1778_v16  ;;  %v871_v57 = vadd.f32 %v839_v14, %v774_v21  ;;  %v672_v39 = vadd.f32 %v640_v31, %v575_v19  ;;  %v906_v31 = vld [vmem:[#allocation2 + $0x198] sm:$0xff] }
  0xd2   : > { %v1060_v4 = vadd.f32 %v1028_v0, %v963_v54  ;;  %v484_v63 = vadd.f32 %v452_v30, %v387_v32  ;;  %v1131_v59 = vmul.f32 %v2426_v38, %v1098_v26  ;;  %v932_v35 = vmul.f32 %v1794_v34, %v2268_v48  ;;  %v1100_v30 = vld [vmem:[#allocation2 + $0x19a] sm:$0xff] }
  0xd3   : > { %v743_v1 = vmul.f32 %v2472_v6, %v1780_v17  ;;  %v388_v49 = vmul.f32 %v2391_v29, %v1767_v8  ;;  %v969_v2 = vadd.f32 %v937_v40, %v871_v57  ;;  %v769_v24 = vadd.f32 %v737_v58, %v672_v39 }
  0xd4   : > { %v1157_v13 = vadd.f32 %v1125_v33, %v1060_v4  ;;  %v581_v52 = vadd.f32 %v549_v5, %v484_v63  ;;  %v1029_v50 = vmul.f32 %v1805_v42, %v2280_v7  ;;  %v453_v18 = vmul.f32 %v2393_v20, %v1770_v10  ;;  %v1002_v7 = vld [vmem:[#allocation2 + $0x189] sm:$0xff] }
  0xd5   : > { %v550_v48 = vmul.f32 %v2410_v55, %v1772_v12  ;;  %v1066_v51 = vadd.f32 %v1034_v11, %v969_v2  ;;  %v866_v61 = vadd.f32 %v834_v44, %v769_v24  ;;  %v840_v29 = vmul.f32 %v2474_v41, %v1788_v28  ;;  %v907_v44 = vld [vmem:[#allocation2 + $0x1a0] sm:$0xff] }
  0xd6   : > { %1618 = vmatmul.msk.f32.gmra.mxu2 %vm290_vm3, %v1157_v13  ;;  %v678_v27 = vadd.f32 %v646_v60, %v581_v52  ;;  %v1126_v37 = vmul.f32 %v2426_v38, %v2301_v3  ;;  %v938_v15 = vmul.f32 %v1794_v34, %v905_v23  ;;  %v485_v46 = vadd.f32 %v453_v18, %v388_v49  ;;  %v1101_v13 = vld [vmem:[#allocation2 + $0x1a2] sm:$0xff] }
  0xd7   : > { %v647_v20 = vmul.f32 %v904_v45, %v1778_v16  ;;  %v1163_v47 = vadd.f32 %v1131_v59, %v1066_v51  ;;  %v964_v56 = vadd.f32 %v932_v35, %v866_v61  ;;  %v389_v0 = vmul.f32 %v2459_v22, %v1767_v8  ;;  %v1004_v59 = vld [vmem:[#allocation2 + $0x1a1] sm:$0xff] }
  0xd8   : > { %v775_v55 = vadd.f32 %v743_v1, %v678_v27  ;;  %v582_v33 = vadd.f32 %v550_v48, %v485_v46  ;;  %v744_v14 = vmul.f32 %v1001_v62, %v1780_v17  ;;  %v454_v53 = vmul.f32 %v2472_v6, %v1770_v10  ;;  %v1003_v6 = vld [vmem:[#allocation2 + $0x199] sm:$0xff] }
  0xd9   : > { %v551_v3 = vmul.f32 %v2474_v41, %v1772_v12  ;;  %1624 = vmatmul.msk.f32.gmra.mxu3 %vm290_vm3, %v1163_v47  ;;  %v1061_v9 = vadd.f32 %v1029_v50, %v964_v56  ;;  %v1035_v43 = vmul.f32 %v1805_v42, %v1002_v7  ;;  %v841_v8 = vmul.f32 %v1098_v26, %v1788_v28 }
  0xda   : > { %v872_v45 = vadd.f32 %v840_v29, %v775_v55  ;;  %v679_v36 = vadd.f32 %v647_v20, %v582_v33  ;;  %v486_v22 = vadd.f32 %v454_v53, %v389_v0  ;;  %v648_v40 = vmul.f32 %v905_v23, %v1778_v16 }
  0xdb   : > { %v1158_v62 = vadd.f32 %v1126_v37, %v1061_v9  ;;  %v1132_v10 = vmul.f32 %v2426_v38, %v1099_v25  ;;  %v939_v12 = vmul.f32 %v1794_v34, %v906_v31  ;;  %v745_v54 = vmul.f32 %v1002_v7, %v1780_v17 }
  0xdc   : > { %v970_v58 = vadd.f32 %v938_v15, %v872_v45  ;;  %v776_v32 = vadd.f32 %v744_v14, %v679_v36  ;;  %v583_v41 = vadd.f32 %v551_v3, %v486_v22  ;;  %v1036_v26 = vmul.f32 %v1805_v42, %v1003_v6 }
  0xdd   : > { %v842_v16 = vmul.f32 %v1099_v25, %v1788_v28  ;;  %v1133_v57 = vmul.f32 %v2426_v38, %v1100_v30  ;;  %v940_v17 = vmul.f32 %v1794_v34, %v907_v44  ;;  %v1037_v28 = vmul.f32 %v1805_v42, %v1004_v59 }
  0xde   : > { %1619 = vmatmul.msk.f32.gmra.mxu2 %vm290_vm3, %v1158_v62  ;;  %v1067_v21 = vadd.f32 %v1035_v43, %v970_v58  ;;  %v873_v19 = vadd.f32 %v841_v8, %v776_v32  ;;  %v680_v11 = vadd.f32 %v648_v40, %v583_v41  ;;  %v1134_v24 = vmul.f32 %v2426_v38, %v1101_v13 }
  0xe0   : > { %v1164_v5 = vadd.f32 %v1132_v10, %v1067_v21  ;;  %v971_v60 = vadd.f32 %v939_v12, %v873_v19  ;;  %v777_v4 = vadd.f32 %v745_v54, %v680_v11  ;;  %v1285_v35 = vpop.f32.mrf.mxu0 }
  0xe1   : > { %1381 = vst [vmem:[%s1696_s24] sm:$0xff] %v1285_v35  ;;  %v1450_v23 = vmul.f32 %v1285_v35, %v1285_v35 }
  0xe2   : > { %1625 = vmatmul.msk.f32.gmra.mxu3 %vm290_vm3, %v1164_v5  ;;  %v1068_v39 = vadd.f32 %v1036_v26, %v971_v60  ;;  %v874_v63 = vadd.f32 %v842_v16, %v777_v4 }
  0xe4   : > { %v1165_v1 = vadd.f32 %v1133_v57, %v1068_v39  ;;  %v972_v49 = vadd.f32 %v940_v17, %v874_v63 }
  0xe6   : > { %v1069_v2 = vadd.f32 %v1037_v28, %v972_v49 }
  0xe8   : > { %v1288_v52 = vpop.f32.mrf.mxu0  ;;  %v1166_v34 = vadd.f32 %v1134_v24, %v1069_v2 }
  0xe9   : > { %1382 = vst [vmem:[%s1696_s24 + $0x8] sm:$0xff] %v1288_v52  ;;  %v1413_v50 = vadd.f32 %v1288_v52, %v1285_v35  ;;  %v1451_v18 = vmul.f32 %v1288_v52, %v1288_v52 }
  0xea   : > { %1626 = vmatmul.msk.f32.gmra.mxu3 %vm290_vm3, %v1165_v1 }
  0xeb   : > { %v1482_v48 = vadd.f32 %v1451_v18, %v1450_v23  ;;  %v1309_v51 = vpop.f32.mrf.mxu1 }
  0xec   : > { %1389 = vst [vmem:[%s1696_s24 + $0x40] sm:$0xff] %v1309_v51  ;;  %v1458_v41 = vmul.f32 %v1309_v51, %v1309_v51 }
  0xf1   : > { %v1291_v42 = vpop.f32.mrf.mxu0 }
  0xf2   : > { %1627 = vmatmul.msk.f32.gmra.mxu3 %vm290_vm3, %v1166_v34  ;;  %1383 = vst [vmem:[%s1696_s24 + $0x10] sm:$0xff] %v1291_v42  ;;  %v1414_v61 = vadd.f32 %v1413_v50, %v1291_v42  ;;  %v1452_v38 = vmul.f32 %v1291_v42, %v1291_v42 }
  0xf4   : > { %v1483_v27 = vadd.f32 %v1482_v48, %v1452_v38 }
  0xfa   : > { %v1312_v29 = vpop.f32.mrf.mxu1 }
  0xfb   : > { %1390 = vst [vmem:[%s1696_s24 + $0x48] sm:$0xff] %v1312_v29  ;;  %v1294_v37 = vpop.f32.mrf.mxu0  ;;  %v1459_v26 = vmul.f32 %v1312_v29, %v1312_v29 }
  0xfc   : > { %1384 = vst [vmem:[%s1696_s24 + $0x18] sm:$0xff] %v1294_v37  ;;  %v1415_v15 = vadd.f32 %v1414_v61, %v1294_v37  ;;  %v1453_v7 = vmul.f32 %v1294_v37, %v1294_v37 }
  0xfe   : > { %v1484_v46 = vadd.f32 %v1483_v27, %v1453_v7 }
 0x103   : > { %v1297_v47 = vpop.f32.mrf.mxu0 }
 0x104   : > { %v2600_v20 = vpop.f32.mrf.mxu2  ;;  %1385 = vst [vmem:[%s1696_s24 + $0x20] sm:$0xff] %v1297_v47  ;;  %v1454_v9 = vmul.f32 %v1297_v47, %v1297_v47  ;;  %v1416_v45 = vadd.f32 %v1415_v15, %v1297_v47 }
 0x105   : > { %v1315_v56 = vpop.f32.mrf.mxu1  ;;  %1397 = vst [vmem:[%s1696_s24 + $0x80] sm:$0xff] %v2600_v20  ;;  %v1466_v42 = vmul.f32 %v2600_v20, %v2600_v20 }
 0x106   : > { %1391 = vst [vmem:[%s1696_s24 + $0x50] sm:$0xff] %v1315_v56  ;;  %v1485_v31 = vadd.f32 %v1484_v46, %v1454_v9  ;;  %v1460_v16 = vmul.f32 %v1315_v56, %v1315_v56 }
 0x10d   : > { %v1300_v55 = vpop.f32.mrf.mxu0 }
 0x10e   : > { %1386 = vst [vmem:[%s1696_s24 + $0x28] sm:$0xff] %v1300_v55  ;;  %v1455_v43 = vmul.f32 %v1300_v55, %v1300_v55  ;;  %v1417_v36 = vadd.f32 %v1416_v45, %v1300_v55 }
 0x10f   : > { %v2607_v0 = vpop.f32.mrf.mxu2 }
 0x110   : > { %1398 = vst [vmem:[%s1696_s24 + $0x88] sm:$0xff] %v2607_v0  ;;  %v1486_v40 = vadd.f32 %v1485_v31, %v1455_v43  ;;  %v1467_v27 = vmul.f32 %v2607_v0, %v2607_v0 }
 0x112   : > { %v1318_v25 = vpop.f32.mrf.mxu1 }
 0x113   : > { %1392 = vst [vmem:[%s1696_s24 + $0x58] sm:$0xff] %v1318_v25  ;;  %v1461_v4 = vmul.f32 %v1318_v25, %v1318_v25 }
 0x11c   : > { %v2612_v33 = vpop.f32.mrf.mxu2 }
 0x11d   : > { %1399 = vst [vmem:[%s1696_s24 + $0x90] sm:$0xff] %v2612_v33  ;;  %v1468_v15 = vmul.f32 %v2612_v33, %v2612_v33 }
 0x120   : > { %v1303_v14 = vpop.f32.mrf.mxu0 }
 0x121   : > { %1387 = vst [vmem:[%s1696_s24 + $0x30] sm:$0xff] %v1303_v14  ;;  %v2617_v53 = vpop.f32.mrf.mxu3  ;;  %v1456_v8 = vmul.f32 %v1303_v14, %v1303_v14  ;;  %v1418_v62 = vadd.f32 %v1417_v36, %v1303_v14 }
 0x122   : > { %1405 = vst [vmem:[%s1696_s24 + $0xc0] sm:$0xff] %v2617_v53 }
 0x123   : > { %v1321_v3 = vpop.f32.mrf.mxu1  ;;  %v1487_v10 = vadd.f32 %v1486_v40, %v1456_v8 }
 0x124   : > { %1393 = vst [vmem:[%s1696_s24 + $0x60] sm:$0xff] %v1321_v3  ;;  %v1462_v59 = vmul.f32 %v1321_v3, %v1321_v3 }
 0x12d   : > { %v1342_v22 = vpop.f32.mrf.mxu2 }
 0x12e   : > { %1400 = vst [vmem:[%s1696_s24 + $0x98] sm:$0xff] %v1342_v22  ;;  %v1469_v47 = vmul.f32 %v1342_v22, %v1342_v22 }
 0x131   : > { %v1306_v58 = vpop.f32.mrf.mxu0 }
 0x132   : > { %1388 = vst [vmem:[%s1696_s24 + $0x38] sm:$0xff] %v1306_v58  ;;  %v1419_v6 = vadd.f32 %v1418_v62, %v1306_v58  ;;  %v1457_v32 = vmul.f32 %v1306_v58, %v1306_v58  ;;  %v2624_v12 = vpop.f32.mrf.mxu3  ;;  %v1474_v58 = vmul.f32 %v2617_v53, %v2617_v53 }
 0x133   : > { %1406 = vst [vmem:[%s1696_s24 + $0xc8] sm:$0xff] %v2624_v12 }
 0x134   : > { %v1420_v54 = vadd.f32 %v1419_v6, %v1309_v51  ;;  %v1488_v21 = vadd.f32 %v1487_v10, %v1457_v32  ;;  %v1324_v19 = vpop.f32.mrf.mxu1 }
 0x135   : > { %1394 = vst [vmem:[%s1696_s24 + $0x68] sm:$0xff] %v1324_v19  ;;  %v1463_v13 = vmul.f32 %v1324_v19, %v1324_v19 }
 0x136   : > { %v1421_v30 = vadd.f32 %v1420_v54, %v1312_v29  ;;  %v1489_v11 = vadd.f32 %v1488_v21, %v1458_v41  ;;  %v1475_v41 = vmul.f32 %v2624_v12, %v2624_v12 }
 0x138   : > { %v1422_v44 = vadd.f32 %v1421_v30, %v1315_v56  ;;  %v1490_v5 = vadd.f32 %v1489_v11, %v1459_v26 }
 0x13a   : > { %v1491_v60 = vadd.f32 %v1490_v5, %v1460_v16  ;;  %v1423_v57 = vadd.f32 %v1422_v44, %v1318_v25 }
 0x13c   : > { %v1492_v39 = vadd.f32 %v1491_v60, %v1461_v4  ;;  %v1424_v35 = vadd.f32 %v1423_v57, %v1321_v3 }
 0x13e   : > { %v1345_v17 = vpop.f32.mrf.mxu2  ;;  %v1493_v49 = vadd.f32 %v1492_v39, %v1462_v59  ;;  %v1425_v28 = vadd.f32 %v1424_v35, %v1324_v19 }
 0x13f   : > { %1401 = vst [vmem:[%s1696_s24 + $0xa0] sm:$0xff] %v1345_v17 }
 0x140   : > { %v1494_v2 = vadd.f32 %v1493_v49, %v1463_v13 }
 0x142   : > { %v1327_v63 = vpop.f32.mrf.mxu1 }
 0x143   : > { %1395 = vst [vmem:[%s1696_s24 + $0x70] sm:$0xff] %v1327_v63  ;;  %v1363_v1 = vpop.f32.mrf.mxu3  ;;  %v1426_v24 = vadd.f32 %v1425_v28, %v1327_v63  ;;  %v1464_v52 = vmul.f32 %v1327_v63, %v1327_v63 }
 0x144   : > { %1407 = vst [vmem:[%s1696_s24 + $0xd0] sm:$0xff] %v1363_v1  ;;  %v1476_v19 = vmul.f32 %v1363_v1, %v1363_v1 }
 0x145   : > { %v1495_v23 = vadd.f32 %v1494_v2, %v1464_v52 }
 0x14b   : > { %v1348_v34 = vpop.f32.mrf.mxu2 }
 0x14c   : > { %1402 = vst [vmem:[%s1696_s24 + $0xa8] sm:$0xff] %v1348_v34  ;;  %v1471_v45 = vmul.f32 %v1348_v34, %v1348_v34 }
 0x14e   : > { %v1330_v50 = vpop.f32.mrf.mxu1 }
 0x14f   : > { %1396 = vst [vmem:[%s1696_s24 + $0x78] sm:$0xff] %v1330_v50  ;;  %v1427_v18 = vadd.f32 %v1426_v24, %v1330_v50  ;;  %v1465_v48 = vmul.f32 %v1330_v50, %v1330_v50  ;;  %v1366_v51 = vpop.f32.mrf.mxu3 }
 0x150   : > { %1408 = vst [vmem:[%s1696_s24 + $0xd8] sm:$0xff] %v1366_v51  ;;  %v1477_v11 = vmul.f32 %v1366_v51, %v1366_v51 }
 0x151   : > { %v1428_v61 = vadd.f32 %v1427_v18, %v2600_v20  ;;  %v1496_v38 = vadd.f32 %v1495_v23, %v1465_v48  ;;  %v1470_v20 = vmul.f32 %v1345_v17, %v1345_v17 }
 0x153   : > { %v1429_v29 = vadd.f32 %v1428_v61, %v2607_v0  ;;  %v1497_v37 = vadd.f32 %v1496_v38, %v1466_v42 }
 0x155   : > { %v1430_v7 = vadd.f32 %v1429_v29, %v2612_v33  ;;  %v1498_v46 = vadd.f32 %v1497_v37, %v1467_v27  ;;  %v1519_v27 = vld [vmem:[%s2669_s4] sm:$0x3] }
 0x157   : > { %v1499_v56 = vadd.f32 %v1498_v46, %v1468_v15  ;;  %v1431_v55 = vadd.f32 %v1430_v7, %v1342_v22 }
 0x159   : > { %v1432_v25 = vadd.f32 %v1431_v55, %v1345_v17  ;;  %v1500_v14 = vadd.f32 %v1499_v56, %v1469_v47  ;;  %v1351_v3 = vpop.f32.mrf.mxu2 }
 0x15a   : > { %1403 = vst [vmem:[%s1696_s24 + $0xb0] sm:$0xff] %v1351_v3  ;;  %v1472_v8 = vmul.f32 %v1351_v3, %v1351_v3 }
 0x15b   : > { %v1433_v9 = vadd.f32 %v1432_v25, %v1348_v34  ;;  %v1501_v0 = vadd.f32 %v1500_v14, %v1470_v20 }
 0x15c   : > { %v1369_v31 = vpop.f32.mrf.mxu3 }
 0x15d   : > { %v1502_v43 = vadd.f32 %v1501_v0, %v1471_v45  ;;  %v1434_v36 = vadd.f32 %v1433_v9, %v1351_v3  ;;  %1409 = vst [vmem:[%s1696_s24 + $0xe0] sm:$0xff] %v1369_v31  ;;  %v1478_v5 = vmul.f32 %v1369_v31, %v1369_v31 }
 0x15f   : > { %v1503_v33 = vadd.f32 %v1502_v43, %v1472_v8 }
 0x161   : > { %v1354_v40 = vpop.f32.mrf.mxu2 }
 0x162   : > { %1404 = vst [vmem:[%s1696_s24 + $0xb8] sm:$0xff] %v1354_v40  ;;  %v1435_v62 = vadd.f32 %v1434_v36, %v1354_v40  ;;  %v1473_v22 = vmul.f32 %v1354_v40, %v1354_v40 }
 0x164   : > { %v1436_v10 = vadd.f32 %v1435_v62, %v2617_v53  ;;  %v1504_v6 = vadd.f32 %v1503_v33, %v1473_v22 }
 0x165   : > { %v1372_v32 = vpop.f32.mrf.mxu3 }
 0x166   : > { %v1437_v54 = vadd.f32 %v1436_v10, %v2624_v12  ;;  %v1505_v21 = vadd.f32 %v1504_v6, %v1474_v58  ;;  %1410 = vst [vmem:[%s1696_s24 + $0xe8] sm:$0xff] %v1372_v32  ;;  %v1479_v17 = vmul.f32 %v1372_v32, %v1372_v32 }
 0x168   : > { %v1438_v26 = vadd.f32 %v1437_v54, %v1363_v1  ;;  %v1506_v30 = vadd.f32 %v1505_v21, %v1475_v41 }
 0x16a   : > { %v1507_v16 = vadd.f32 %v1506_v30, %v1476_v19  ;;  %v1439_v44 = vadd.f32 %v1438_v26, %v1366_v51 }
 0x16c   : > { %v1440_v60 = vadd.f32 %v1439_v44, %v1369_v31  ;;  %v1508_v53 = vadd.f32 %v1507_v16, %v1477_v11 }
 0x16d   : > { %v1375_v4 = vpop.f32.mrf.mxu3 }
 0x16e   : > { %v1441_v57 = vadd.f32 %v1440_v60, %v1372_v32  ;;  %v1509_v39 = vadd.f32 %v1508_v53, %v1478_v5  ;;  %1411 = vst [vmem:[%s1696_s24 + $0xf0] sm:$0xff] %v1375_v4  ;;  %v1480_v59 = vmul.f32 %v1375_v4, %v1375_v4 }
 0x170   : > { %v1510_v63 = vadd.f32 %v1509_v39, %v1479_v17  ;;  %v1442_v12 = vadd.f32 %v1441_v57, %v1375_v4 }
 0x172   : > { %v1511_v35 = vadd.f32 %v1510_v63, %v1480_v59 }
 0x175   : > { %v1378_v49 = vpop.f32.mrf.mxu3 }
 0x176   : > { %1412 = vst [vmem:[%s1696_s24 + $0xf8] sm:$0xff] %v1378_v49  ;;  %v1443_v1 = vadd.f32 %v1442_v12, %v1378_v49  ;;  %v1481_v28 = vmul.f32 %v1378_v49, %v1378_v49 }
 0x178   : > { %v1444_v13 = vrot.slane %v1443_v1, 4  ;;  %v1512_v2 = vadd.f32 %v1511_v35, %v1481_v28 }
 0x17a   : > { %v1445_v24 = vadd.f32 %v1444_v13, %v1443_v1  ;;  %v1513_v52 = vrot.slane %v1512_v2, 4 }
 0x17c   : > { %v1446_v34 = vrot.slane %v1445_v24, 2  ;;  %v1514_v23 = vadd.f32 %v1513_v52, %v1512_v2 }
 0x17e   : > { %v1447_v50 = vadd.f32 %v1446_v34, %v1445_v24  ;;  %v1515_v18 = vrot.slane %v1514_v23, 2 }
 0x180   : > { %v1448_v48 = vrot.slane %v1447_v50, 1  ;;  %v1516_v51 = vadd.f32 %v1515_v18, %v1514_v23 }
 0x182   : > { %v1517_v42 = vrot.slane %v1516_v51, 1  ;;  %v1449_v61 = vadd.f32 %v1448_v48, %v1447_v50 }
 0x184   : > { %v1518_v38 = vadd.f32 %v1517_v42, %v1516_v51 }
 0x186   : > { %v1521_v29 = vsel %vm1520_vm4, %v1449_v61, %v1518_v38 }
 0x187   : > { %v1522_v37 = vadd.f32 %v1521_v29, %v1519_v27 }
 0x189   : > { %1523 = vst [vmem:[%s2669_s4] sm:$0x3] %v1522_v37 }
 0x18a PF: > { %s15_s15 = sadd.s32 1, %s1652_s15  }
 0x18b   : > { %p12_p5 = scmp.ge.s32.totalorder %s15_s15, 4  }
 0x18d   :  { %14 = sbr.rel (!%p12_p5) target bundleno = 1 (0x1), region = 76 }

</bundles_post_ra>
